<compile_context>
chip_gen: v5e
topology: v5e:2x2
jax: 0.10.0
libtpu: 0.0.40
codegen_flags: <defaults>
</compile_context>

<pallas_src>
import math

import jax
import jax.numpy as jnp
from jax.experimental import pallas as pl
from jax.experimental.pallas import tpu as pltpu

_LN_EPS = 1e-5


def _vmem_limit_bytes():
    """Chip-aware VMEM budget with headroom for Mosaic scratch / pipeline bufs."""
    limit = 48 * 1024 * 1024              # safe on v7x (64 MiB physical per TC)
    try:
        cap = int(pltpu.get_tpu_info().vmem_capacity_bytes)
        if cap >= 64 * 1024 * 1024:
            limit = (cap * 3) // 4        # ~96 MiB on v5e/v6e, ~48 MiB on v7x
    except Exception:
        pass
    return limit


def _layernorm(x, gamma, beta):
    mu = jnp.mean(x, axis=-1, keepdims=True)
    xc = x - mu
    var = jnp.mean(xc * xc, axis=-1, keepdims=True)
    return xc * jax.lax.rsqrt(var + _LN_EPS) * gamma + beta


# --------------------------------------------------------------------------
# Fused kernel: one grid step = one (batch item, encoder layer).
# --------------------------------------------------------------------------
def _make_trans_kernel(n_heads):
    def kernel(x_ref, ln1_ref, wqkv_ref, bqkv_ref, wo_ref, bo_ref,
               ln2_ref, w1_ref, b1_ref, w2_ref, b2_ref, o_ref):
        layer = pl.program_id(1)

        # First layer for this batch block: seed the VMEM-resident accumulator.
        @pl.when(layer == 0)
        def _():
            o_ref[...] = x_ref[...]

        x = o_ref[0].astype(jnp.float32)               # [S, D], f32 elementwise
        s_len, d_model = x.shape
        d_head = d_model // n_heads
        cdt = wqkv_ref.dtype                           # MXU feed dtype
        scale = 1.0 / math.sqrt(d_head)

        # ---- sublayer 1: LayerNorm1 + multi-head self-attention + residual --
        ln1 = ln1_ref[0]                               # [2, D]  (gamma; beta)
        xn = _layernorm(x, ln1[0:1, :], ln1[1:2, :])
        xn_c = xn.astype(cdt)

        # Fused, lane-dense QKV projection: one [S,D] x [D,3D] matmul.
        qkv = jnp.dot(xn_c, wqkv_ref[0],
                      preferred_element_type=jnp.float32) + bqkv_ref[0]  # [S,3D]

        head_outs = []
        for h in range(n_heads):                       # static unroll; H small
            q = qkv[:, h * d_head:(h + 1) * d_head]
            k = qkv[:, d_model + h * d_head:d_model + (h + 1) * d_head]
            v = qkv[:, 2 * d_model + h * d_head:2 * d_model + (h + 1) * d_head]
            s = jax.lax.dot_general(q.astype(cdt), k.astype(cdt),
                                    (((1,), (1,)), ((), ())),
                                    preferred_element_type=jnp.float32) * scale
            s = s - jnp.max(s, axis=-1, keepdims=True)
            e = jnp.exp(s)
            p = e * pl.reciprocal(jnp.sum(e, axis=-1, keepdims=True), approx=True)
            # TODO(synk): attention-score dropout (train mode) not emitted.
            head_outs.append(jnp.dot(p.astype(cdt), v.astype(cdt),
                                     preferred_element_type=jnp.float32))

        # Single full-depth output projection on the concatenated heads.
        concat = jnp.concatenate(head_outs, axis=-1).astype(cdt)     # [S, D]
        attn = jnp.dot(concat, wo_ref[0],
                       preferred_element_type=jnp.float32) + bo_ref[0]
        x = x + attn                                                 # residual 1

        # ---- sublayer 2: LayerNorm2 + FFN (Linear -> ReLU -> Linear) + resid -
        ln2 = ln2_ref[0]
        xn2 = _layernorm(x, ln2[0:1, :], ln2[1:2, :])
        h1 = jnp.dot(xn2.astype(cdt), w1_ref[0],
                     preferred_element_type=jnp.float32) + b1_ref[0]
        h1 = jnp.maximum(h1, 0.0)
        # TODO(synk): FFN dropout (train mode) not emitted.
        y = jnp.dot(h1.astype(cdt), w2_ref[0],
                    preferred_element_type=jnp.float32) + b2_ref[0]

        o_ref[0] = (x + y).astype(o_ref.dtype)

    return kernel


# --------------------------------------------------------------------------
# One-time parameter packing (hoisted out of the per-forward path).
# --------------------------------------------------------------------------
def pack_trans_block_params(layer_params, compute_dtype=jnp.bfloat16):
    """Repack per-layer param dicts once into stacked, kernel-ready arrays."""
    cdt = compute_dtype
    f32 = jnp.float32

    def stack(fn, dtype):
        return jnp.stack([fn(p) for p in layer_params], axis=0).astype(dtype)

    return dict(
        ln1=stack(lambda p: jnp.stack([p["g1"], p["be1"]], 0), f32),          # [L,2,D]
        wqkv=stack(lambda p: jnp.concatenate([p["wq"], p["wk"], p["wv"]], 1), cdt),  # [L,D,3D]
        bqkv=stack(lambda p: jnp.concatenate([p["bq"], p["bk"], p["bv"]], 0)[None, :], f32),  # [L,1,3D]
        wo=stack(lambda p: p["wo"], cdt),                                     # [L,D,D]
        bo=stack(lambda p: p["bo"][None, :], f32),                            # [L,1,D]
        ln2=stack(lambda p: jnp.stack([p["g2"], p["be2"]], 0), f32),          # [L,2,D]
        w1=stack(lambda p: p["w1"], cdt),                                     # [L,D,2D]
        b1=stack(lambda p: p["b1"][None, :], f32),                            # [L,1,2D]
        w2=stack(lambda p: p["w2"], cdt),                                     # [L,2D,D]
        b2=stack(lambda p: p["b2"][None, :], f32),                            # [L,1,D]
    )


# --------------------------------------------------------------------------
# Wrapper: whole transBlock forward = one pallas_call.
# --------------------------------------------------------------------------
def trans_block(x, packed, heads):
    batch, s_len, d_model = x.shape
    n_layers = packed["wqkv"].shape[0]
    hidden = packed["w1"].shape[2]
    w_itm = jnp.dtype(packed["wqkv"].dtype).itemsize
    x_itm = x.dtype.itemsize

    x_idx = lambda b, l: (b, 0, 0)   # constant across layer axis -> resident
    w_idx = lambda b, l: (l, 0, 0)   # streamed per layer

    in_specs = [
        pl.BlockSpec((1, s_len, d_model), x_idx),              # x
        pl.BlockSpec((1, 2, d_model), w_idx),                  # ln1 (gamma;beta)
        pl.BlockSpec((1, d_model, 3 * d_model), w_idx),        # wqkv
        pl.BlockSpec((1, 1, 3 * d_model), w_idx),              # bqkv
        pl.BlockSpec((1, d_model, d_model), w_idx),            # wo
        pl.BlockSpec((1, 1, d_model), w_idx),                  # bo
        pl.BlockSpec((1, 2, d_model), w_idx),                  # ln2
        pl.BlockSpec((1, d_model, hidden), w_idx),             # w1
        pl.BlockSpec((1, 1, hidden), w_idx),                   # b1
        pl.BlockSpec((1, hidden, d_model), w_idx),             # w2
        pl.BlockSpec((1, 1, d_model), w_idx),                  # b2
    ]
    out_specs = pl.BlockSpec((1, s_len, d_model), x_idx)

    flops = batch * n_layers * (
        2 * s_len * d_model * 3 * d_model        # QKV projection
        + 4 * s_len * s_len * d_model            # scores + PV (all heads)
        + 2 * s_len * d_model * d_model          # output projection
        + 4 * s_len * d_model * hidden)          # FFN
    transcendentals = batch * n_layers * (heads * s_len * s_len + 3 * s_len)
    weight_bytes = (3 * d_model * d_model + d_model * d_model
                    + 2 * d_model * hidden) * w_itm
    bytes_accessed = (2 * batch * s_len * d_model * x_itm
                      + batch * n_layers * weight_bytes
                      + n_layers * (7 * d_model + hidden) * 4)

    return pl.pallas_call(
        _make_trans_kernel(heads),
        out_shape=jax.ShapeDtypeStruct((batch, s_len, d_model), x.dtype),
        grid_spec=pltpu.PrefetchScalarGridSpec(
            num_scalar_prefetch=0,
            grid=(batch, n_layers),
            in_specs=in_specs,
            out_specs=out_specs,
        ),
        compiler_params=pltpu.CompilerParams(
            dimension_semantics=("parallel", "arbitrary"),
            vmem_limit_bytes=_vmem_limit_bytes()),
        cost_estimate=pl.CostEstimate(flops=flops,
                                      transcendentals=transcendentals,
                                      bytes_accessed=bytes_accessed),
    )(x, packed["ln1"], packed["wqkv"], packed["bqkv"], packed["wo"],
      packed["bo"], packed["ln2"], packed["w1"], packed["b1"],
      packed["w2"], packed["b2"])


# --------------------------------------------------------------------------
# Parameter init (matches nn.Linear / nn.LayerNorm default init scheme)
# --------------------------------------------------------------------------
def init_encoder_layer_params(key, d_model, dtype=jnp.float32):
    hidden = 2 * d_model
    ks = jax.random.split(key, 12)

    def linear(kw, kb, fan_in, fan_out):
        bound = 1.0 / math.sqrt(fan_in)
        w = jax.random.uniform(kw, (fan_in, fan_out), dtype, -bound, bound)
        b = jax.random.uniform(kb, (fan_out,), dtype, -bound, bound)
        return w, b

    wq, bq = linear(ks[0], ks[1], d_model, d_model)
    wk, bk = linear(ks[2], ks[3], d_model, d_model)
    wv, bv = linear(ks[4], ks[5], d_model, d_model)
    wo, bo = linear(ks[6], ks[7], d_model, d_model)
    w1, b1 = linear(ks[8], ks[9], d_model, hidden)
    w2, b2 = linear(ks[10], ks[11], hidden, d_model)
    return dict(
        g1=jnp.ones((d_model,), dtype), be1=jnp.zeros((d_model,), dtype),
        g2=jnp.ones((d_model,), dtype), be2=jnp.zeros((d_model,), dtype),
        wq=wq, bq=bq, wk=wk, bk=bk, wv=wv, bv=bv, wo=wo, bo=bo,
        w1=w1, b1=b1, w2=w2, b2=b2)


# --------------------------------------------------------------------------
# Pure-JAX reference (high-precision f32)
# --------------------------------------------------------------------------
def _ln_ref(x, g, b):
    mu = x.mean(-1, keepdims=True)
    var = ((x - mu) ** 2).mean(-1, keepdims=True)
    return (x - mu) / jnp.sqrt(var + _LN_EPS) * g + b


def encoder_layer_ref(x, p, heads):
    batch, s_len, d_model = x.shape
    d_head = d_model // heads
    hp = jax.lax.Precision.HIGHEST

    x2 = _ln_ref(x, p["g1"], p["be1"])
    q = jnp.matmul(x2, p["wq"], precision=hp) + p["bq"]
    k = jnp.matmul(x2, p["wk"], precision=hp) + p["bk"]
    v = jnp.matmul(x2, p["wv"], precision=hp) + p["bv"]
    split = lambda t: t.reshape(batch, s_len, heads, d_head).transpose(0, 2, 1, 3)
    qh, kh, vh = split(q), split(k), split(v)
    s = jnp.einsum("bhqd,bhkd->bhqk", qh, kh, precision=hp) / math.sqrt(d_head)
    pr = jax.nn.softmax(s, axis=-1)
    o = jnp.einsum("bhqk,bhkd->bhqd", pr, vh, precision=hp)
    concat = o.transpose(0, 2, 1, 3).reshape(batch, s_len, d_model)
    x = x + jnp.matmul(concat, p["wo"], precision=hp) + p["bo"]

    x2 = _ln_ref(x, p["g2"], p["be2"])
    hdn = jnp.maximum(jnp.matmul(x2, p["w1"], precision=hp) + p["b1"], 0.0)
    y = jnp.matmul(hdn, p["w2"], precision=hp) + p["b2"]
    return x + y


def trans_block_ref(x, layer_params, heads):
    for p in layer_params:
        x = encoder_layer_ref(x, p, heads)
    return x


if __name__ == "__main__":
    key = jax.random.PRNGKey(0)
    kx, kp = jax.random.split(key)

    # Small but lane-dense shapes: d_model multiple of 128.
    batch, seq, d_model, heads, n_trans = 2, 16, 128, 4, 2
    x = jax.random.normal(kx, (batch, seq, d_model), jnp.float32)
    layer_keys = jax.random.split(kp, n_trans)
    params = [init_encoder_layer_params(k, d_model) for k in layer_keys]

    ref = trans_block_ref(x, params, heads)
    ref_scale = float(jnp.max(jnp.abs(ref))) + 1e-6

    # f32 MXU path: near-exact check.
    packed_f32 = pack_trans_block_params(params, compute_dtype=jnp.float32)
    y_f32 = trans_block(x, packed_f32, heads)
    jax.block_until_ready(y_f32)
    assert y_f32.shape == (batch, seq, d_model)
    rel_f32 = float(jnp.max(jnp.abs(y_f32 - ref))) / ref_scale
    assert rel_f32 < 2e-2, f"f32 path mismatch: rel={rel_f32}"

    # bf16 MXU feeds with f32 accumulation (recommended on v6e/v7x).
    packed_bf16 = pack_trans_block_params(params, compute_dtype=jnp.bfloat16)
    y_bf16 = trans_block(x, packed_bf16, heads)
    jax.block_until_ready(y_bf16)
    assert y_bf16.shape == (batch, seq, d_model)
    rel_bf16 = float(jnp.max(jnp.abs(y_bf16 - ref))) / ref_scale
    assert rel_bf16 < 6e-2, f"bf16 path mismatch: rel={rel_bf16}"

    print("KERNEL_OK")
</pallas_src>

<mosaic_0001>
module attributes {stable_mosaic.version = 11 : i64} {
  func.func @kernel(%arg0: i32, %arg1: i32, %arg2: memref<1x16x128xf32, #tpu.memory_space<vmem>>, %arg3: memref<1x2x128xf32, #tpu.memory_space<vmem>>, %arg4: memref<1x128x384xf32, #tpu.memory_space<vmem>>, %arg5: memref<1x1x384xf32, #tpu.memory_space<vmem>>, %arg6: memref<1x128x128xf32, #tpu.memory_space<vmem>>, %arg7: memref<1x1x128xf32, #tpu.memory_space<vmem>>, %arg8: memref<1x2x128xf32, #tpu.memory_space<vmem>>, %arg9: memref<1x128x256xf32, #tpu.memory_space<vmem>>, %arg10: memref<1x1x256xf32, #tpu.memory_space<vmem>>, %arg11: memref<1x256x128xf32, #tpu.memory_space<vmem>>, %arg12: memref<1x1x128xf32, #tpu.memory_space<vmem>>, %arg13: memref<1x16x128xf32, #tpu.memory_space<vmem>>) attributes {dimension_semantics = [#tpu.dimension_semantics<parallel>, #tpu.dimension_semantics<arbitrary>], iteration_bounds = array<i64: 2, 2>, scalar_prefetch = 0 : i64, scratch_operands = 0 : i64, tpu.core_type = #tpu.core_type<tc>, window_params = [{transform_indices = @transform_0, window_bounds = array<i64: 1, 16, 128>}, {transform_indices = @transform_1, window_bounds = array<i64: 1, 2, 128>}, {transform_indices = @transform_2, window_bounds = array<i64: 1, 128, 384>}, {transform_indices = @transform_3, window_bounds = array<i64: 1, 1, 384>}, {transform_indices = @transform_4, window_bounds = array<i64: 1, 128, 128>}, {transform_indices = @transform_5, window_bounds = array<i64: 1, 1, 128>}, {transform_indices = @transform_6, window_bounds = array<i64: 1, 2, 128>}, {transform_indices = @transform_7, window_bounds = array<i64: 1, 128, 256>}, {transform_indices = @transform_8, window_bounds = array<i64: 1, 1, 256>}, {transform_indices = @transform_9, window_bounds = array<i64: 1, 256, 128>}, {transform_indices = @transform_10, window_bounds = array<i64: 1, 1, 128>}, {transform_indices = @transform_11, window_bounds = array<i64: 1, 16, 128>}]} {
    %c0_i32 = arith.constant 0 : i32
    %0 = arith.cmpi eq, %arg1, %c0_i32 : i32
    %1 = arith.extui %0 : i1 to i32
    %c0_i32_0 = arith.constant 0 : i32
    %2 = arith.cmpi ne, %1, %c0_i32_0 : i32
    scf.if %2 {
      %c0_70 = arith.constant 0 : index
      %c0_71 = arith.constant 0 : index
      %c0_72 = arith.constant 0 : index
      %157 = vector.load %arg2[%c0_70, %c0_71, %c0_72] : memref<1x16x128xf32, #tpu.memory_space<vmem>>, vector<1x16x128xf32>
      %c0_73 = arith.constant 0 : index
      %c0_74 = arith.constant 0 : index
      %c0_75 = arith.constant 0 : index
      %158 = vector.load %arg13[%c0_73, %c0_74, %c0_75] : memref<1x16x128xf32, #tpu.memory_space<vmem>>, vector<1x16x128xf32>
      tpu.vector_store %arg13[%c0_73, %c0_74, %c0_75], %157 {strides = array<i32>} : memref<1x16x128xf32, #tpu.memory_space<vmem>>, vector<1x16x128xf32>,
    } else {
    }
    %c0 = arith.constant 0 : index
    %c0_1 = arith.constant 0 : index
    %c0_2 = arith.constant 0 : index
    %3 = vector.load %arg13[%c0, %c0_1, %c0_2] : memref<1x16x128xf32, #tpu.memory_space<vmem>>, vector<1x16x128xf32>
    %4 = vector.shape_cast %3 : vector<1x16x128xf32> to vector<16x128xf32>
    %c0_3 = arith.constant 0 : index
    %c0_4 = arith.constant 0 : index
    %c0_5 = arith.constant 0 : index
    %5 = vector.load %arg3[%c0_3, %c0_4, %c0_5] : memref<1x2x128xf32, #tpu.memory_space<vmem>>, vector<1x2x128xf32>
    %6 = vector.shape_cast %5 : vector<1x2x128xf32> to vector<2x128xf32>
    %7 = vector.extract_strided_slice %6 {offsets = [0, 0], sizes = [1, 128], strides = [1, 1]} : vector<2x128xf32> to vector<1x128xf32>
    %8 = vector.extract_strided_slice %6 {offsets = [1, 0], sizes = [1, 128], strides = [1, 1]} : vector<2x128xf32> to vector<1x128xf32>
    %cst = arith.constant dense<0.000000e+00> : vector<16xf32>
    %9 = vector.multi_reduction <add>, %4, %cst [1] : vector<16x128xf32> to vector<16xf32>
    %10 = vector.shape_cast %9 : vector<16xf32> to vector<16x1xf32>
    %cst_6 = arith.constant 1.280000e+02 : f32
    %11 = vector.broadcast %cst_6 : f32 to vector<16x1xf32>
    %12 = arith.divf %10, %11 : vector<16x1xf32>
    %13 = vector.broadcast %12 : vector<16x1xf32> to vector<16x128xf32>
    %14 = arith.subf %4, %13 : vector<16x128xf32>
    %15 = arith.mulf %14, %14 : vector<16x128xf32>
    %cst_7 = arith.constant dense<0.000000e+00> : vector<16xf32>
    %16 = vector.multi_reduction <add>, %15, %cst_7 [1] : vector<16x128xf32> to vector<16xf32>
    %17 = vector.shape_cast %16 : vector<16xf32> to vector<16x1xf32>
    %cst_8 = arith.constant 1.280000e+02 : f32
    %18 = vector.broadcast %cst_8 : f32 to vector<16x1xf32>
    %19 = arith.divf %17, %18 : vector<16x1xf32>
    %cst_9 = arith.constant 9.99999974E-6 : f32
    %20 = vector.broadcast %cst_9 : f32 to vector<16x1xf32>
    %21 = arith.addf %19, %20 : vector<16x1xf32>
    %22 = math.rsqrt %21 : vector<16x1xf32>
    %23 = vector.broadcast %22 : vector<16x1xf32> to vector<16x128xf32>
    %24 = arith.mulf %14, %23 : vector<16x128xf32>
    %25 = vector.broadcast %7 : vector<1x128xf32> to vector<16x128xf32>
    %26 = arith.mulf %24, %25 : vector<16x128xf32>
    %27 = vector.broadcast %8 : vector<1x128xf32> to vector<16x128xf32>
    %28 = arith.addf %26, %27 : vector<16x128xf32>
    %c0_10 = arith.constant 0 : index
    %c0_11 = arith.constant 0 : index
    %c0_12 = arith.constant 0 : index
    %29 = vector.load %arg4[%c0_10, %c0_11, %c0_12] : memref<1x128x384xf32, #tpu.memory_space<vmem>>, vector<1x128x384xf32>
    %30 = vector.shape_cast %29 : vector<1x128x384xf32> to vector<128x384xf32>
    %cst_13 = arith.constant dense<0.000000e+00> : vector<16x384xf32>
    %31 = tpu.matmul %28, %30, %cst_13 {dimension_numbers = #tpu.dot_dimension_numbers<[1], [0], [0], [1], [0, 0, 1, 1], [], []>} : vector<16x128xf32>, vector<128x384xf32>, vector<16x384xf32> -> vector<16x384xf32>
    %c0_14 = arith.constant 0 : index
    %c0_15 = arith.constant 0 : index
    %c0_16 = arith.constant 0 : index
    %32 = vector.load %arg5[%c0_14, %c0_15, %c0_16] : memref<1x1x384xf32, #tpu.memory_space<vmem>>, vector<1x1x384xf32>
    %33 = vector.shape_cast %32 : vector<1x1x384xf32> to vector<1x384xf32>
    %34 = vector.broadcast %33 : vector<1x384xf32> to vector<16x384xf32>
    %35 = arith.addf %31, %34 : vector<16x384xf32>
    %36 = vector.extract_strided_slice %35 {offsets = [0, 0], sizes = [16, 32], strides = [1, 1]} : vector<16x384xf32> to vector<16x32xf32>
    %37 = vector.extract_strided_slice %35 {offsets = [0, 128], sizes = [16, 32], strides = [1, 1]} : vector<16x384xf32> to vector<16x32xf32>
    %38 = vector.extract_strided_slice %35 {offsets = [0, 256], sizes = [16, 32], strides = [1, 1]} : vector<16x384xf32> to vector<16x32xf32>
    %cst_17 = arith.constant dense<0.000000e+00> : vector<16x16xf32>
    %39 = tpu.matmul %36, %37, %cst_17 {dimension_numbers = #tpu.dot_dimension_numbers<[1], [1], [0], [0], [0, 0, 1, 0], [], []>} : vector<16x32xf32>, vector<16x32xf32>, vector<16x16xf32> -> vector<16x16xf32>
    %cst_18 = arith.constant 0.176776692 : f32
    %40 = vector.broadcast %cst_18 : f32 to vector<16x16xf32>
    %41 = arith.mulf %39, %40 : vector<16x16xf32>
    %cst_19 = arith.constant dense<0xFF800000> : vector<16xf32>
    %42 = vector.multi_reduction <maximumf>, %41, %cst_19 [1] : vector<16x16xf32> to vector<16xf32>
    %43 = vector.shape_cast %42 : vector<16xf32> to vector<16x1xf32>
    %44 = vector.broadcast %43 : vector<16x1xf32> to vector<16x16xf32>
    %45 = arith.subf %41, %44 : vector<16x16xf32>
    %46 = math.exp %45 : vector<16x16xf32>
    %cst_20 = arith.constant dense<0.000000e+00> : vector<16xf32>
    %47 = vector.multi_reduction <add>, %46, %cst_20 [1] : vector<16x16xf32> to vector<16xf32>
    %48 = vector.shape_cast %47 : vector<16xf32> to vector<16x1xf32>
    %49 = tpu.reciprocal %48 {approx = true} : vector<16x1xf32> -> vector<16x1xf32>
    %50 = vector.broadcast %49 : vector<16x1xf32> to vector<16x16xf32>
    %51 = arith.mulf %46, %50 : vector<16x16xf32>
    %cst_21 = arith.constant dense<0.000000e+00> : vector<16x32xf32>
    %52 = tpu.matmul %51, %38, %cst_21 {dimension_numbers = #tpu.dot_dimension_numbers<[1], [0], [0], [1], [0, 0, 1, 1], [], []>} : vector<16x16xf32>, vector<16x32xf32>, vector<16x32xf32> -> vector<16x32xf32>
    %53 = vector.extract_strided_slice %35 {offsets = [0, 32], sizes = [16, 32], strides = [1, 1]} : vector<16x384xf32> to vector<16x32xf32>
    %54 = vector.extract_strided_slice %35 {offsets = [0, 160], sizes = [16, 32], strides = [1, 1]} : vector<16x384xf32> to vector<16x32xf32>
    %55 = vector.extract_strided_slice %35 {offsets = [0, 288], sizes = [16, 32], strides = [1, 1]} : vector<16x384xf32> to vector<16x32xf32>
    %cst_22 = arith.constant dense<0.000000e+00> : vector<16x16xf32>
    %56 = tpu.matmul %53, %54, %cst_22 {dimension_numbers = #tpu.dot_dimension_numbers<[1], [1], [0], [0], [0, 0, 1, 0], [], []>} : vector<16x32xf32>, vector<16x32xf32>, vector<16x16xf32> -> vector<16x16xf32>
    %cst_23 = arith.constant 0.176776692 : f32
    %57 = vector.broadcast %cst_23 : f32 to vector<16x16xf32>
    %58 = arith.mulf %56, %57 : vector<16x16xf32>
    %cst_24 = arith.constant dense<0xFF800000> : vector<16xf32>
    %59 = vector.multi_reduction <maximumf>, %58, %cst_24 [1] : vector<16x16xf32> to vector<16xf32>
    %60 = vector.shape_cast %59 : vector<16xf32> to vector<16x1xf32>
    %61 = vector.broadcast %60 : vector<16x1xf32> to vector<16x16xf32>
    %62 = arith.subf %58, %61 : vector<16x16xf32>
    %63 = math.exp %62 : vector<16x16xf32>
    %cst_25 = arith.constant dense<0.000000e+00> : vector<16xf32>
    %64 = vector.multi_reduction <add>, %63, %cst_25 [1] : vector<16x16xf32> to vector<16xf32>
    %65 = vector.shape_cast %64 : vector<16xf32> to vector<16x1xf32>
    %66 = tpu.reciprocal %65 {approx = true} : vector<16x1xf32> -> vector<16x1xf32>
    %67 = vector.broadcast %66 : vector<16x1xf32> to vector<16x16xf32>
    %68 = arith.mulf %63, %67 : vector<16x16xf32>
    %cst_26 = arith.constant dense<0.000000e+00> : vector<16x32xf32>
    %69 = tpu.matmul %68, %55, %cst_26 {dimension_numbers = #tpu.dot_dimension_numbers<[1], [0], [0], [1], [0, 0, 1, 1], [], []>} : vector<16x16xf32>, vector<16x32xf32>, vector<16x32xf32> -> vector<16x32xf32>
    %70 = vector.extract_strided_slice %35 {offsets = [0, 64], sizes = [16, 32], strides = [1, 1]} : vector<16x384xf32> to vector<16x32xf32>
    %71 = vector.extract_strided_slice %35 {offsets = [0, 192], sizes = [16, 32], strides = [1, 1]} : vector<16x384xf32> to vector<16x32xf32>
    %72 = vector.extract_strided_slice %35 {offsets = [0, 320], sizes = [16, 32], strides = [1, 1]} : vector<16x384xf32> to vector<16x32xf32>
    %cst_27 = arith.constant dense<0.000000e+00> : vector<16x16xf32>
    %73 = tpu.matmul %70, %71, %cst_27 {dimension_numbers = #tpu.dot_dimension_numbers<[1], [1], [0], [0], [0, 0, 1, 0], [], []>} : vector<16x32xf32>, vector<16x32xf32>, vector<16x16xf32> -> vector<16x16xf32>
    %cst_28 = arith.constant 0.176776692 : f32
    %74 = vector.broadcast %cst_28 : f32 to vector<16x16xf32>
    %75 = arith.mulf %73, %74 : vector<16x16xf32>
    %cst_29 = arith.constant dense<0xFF800000> : vector<16xf32>
    %76 = vector.multi_reduction <maximumf>, %75, %cst_29 [1] : vector<16x16xf32> to vector<16xf32>
    %77 = vector.shape_cast %76 : vector<16xf32> to vector<16x1xf32>
    %78 = vector.broadcast %77 : vector<16x1xf32> to vector<16x16xf32>
    %79 = arith.subf %75, %78 : vector<16x16xf32>
    %80 = math.exp %79 : vector<16x16xf32>
    %cst_30 = arith.constant dense<0.000000e+00> : vector<16xf32>
    %81 = vector.multi_reduction <add>, %80, %cst_30 [1] : vector<16x16xf32> to vector<16xf32>
    %82 = vector.shape_cast %81 : vector<16xf32> to vector<16x1xf32>
    %83 = tpu.reciprocal %82 {approx = true} : vector<16x1xf32> -> vector<16x1xf32>
    %84 = vector.broadcast %83 : vector<16x1xf32> to vector<16x16xf32>
    %85 = arith.mulf %80, %84 : vector<16x16xf32>
    %cst_31 = arith.constant dense<0.000000e+00> : vector<16x32xf32>
    %86 = tpu.matmul %85, %72, %cst_31 {dimension_numbers = #tpu.dot_dimension_numbers<[1], [0], [0], [1], [0, 0, 1, 1], [], []>} : vector<16x16xf32>, vector<16x32xf32>, vector<16x32xf32> -> vector<16x32xf32>
    %87 = vector.extract_strided_slice %35 {offsets = [0, 96], sizes = [16, 32], strides = [1, 1]} : vector<16x384xf32> to vector<16x32xf32>
    %88 = vector.extract_strided_slice %35 {offsets = [0, 224], sizes = [16, 32], strides = [1, 1]} : vector<16x384xf32> to vector<16x32xf32>
    %89 = vector.extract_strided_slice %35 {offsets = [0, 352], sizes = [16, 32], strides = [1, 1]} : vector<16x384xf32> to vector<16x32xf32>
    %cst_32 = arith.constant dense<0.000000e+00> : vector<16x16xf32>
    %90 = tpu.matmul %87, %88, %cst_32 {dimension_numbers = #tpu.dot_dimension_numbers<[1], [1], [0], [0], [0, 0, 1, 0], [], []>} : vector<16x32xf32>, vector<16x32xf32>, vector<16x16xf32> -> vector<16x16xf32>
    %cst_33 = arith.constant 0.176776692 : f32
    %91 = vector.broadcast %cst_33 : f32 to vector<16x16xf32>
    %92 = arith.mulf %90, %91 : vector<16x16xf32>
    %cst_34 = arith.constant dense<0xFF800000> : vector<16xf32>
    %93 = vector.multi_reduction <maximumf>, %92, %cst_34 [1] : vector<16x16xf32> to vector<16xf32>
    %94 = vector.shape_cast %93 : vector<16xf32> to vector<16x1xf32>
    %95 = vector.broadcast %94 : vector<16x1xf32> to vector<16x16xf32>
    %96 = arith.subf %92, %95 : vector<16x16xf32>
    %97 = math.exp %96 : vector<16x16xf32>
    %cst_35 = arith.constant dense<0.000000e+00> : vector<16xf32>
    %98 = vector.multi_reduction <add>, %97, %cst_35 [1] : vector<16x16xf32> to vector<16xf32>
    %99 = vector.shape_cast %98 : vector<16xf32> to vector<16x1xf32>
    %100 = tpu.reciprocal %99 {approx = true} : vector<16x1xf32> -> vector<16x1xf32>
    %101 = vector.broadcast %100 : vector<16x1xf32> to vector<16x16xf32>
    %102 = arith.mulf %97, %101 : vector<16x16xf32>
    %cst_36 = arith.constant dense<0.000000e+00> : vector<16x32xf32>
    %103 = tpu.matmul %102, %89, %cst_36 {dimension_numbers = #tpu.dot_dimension_numbers<[1], [0], [0], [1], [0, 0, 1, 1], [], []>} : vector<16x16xf32>, vector<16x32xf32>, vector<16x32xf32> -> vector<16x32xf32>
    %104 = tpu.concatenate %52, %69, %86, %103 in 1 : vector<16x32xf32>, vector<16x32xf32>, vector<16x32xf32>, vector<16x32xf32> -> vector<16x128xf32>
    %c0_37 = arith.constant 0 : index
    %c0_38 = arith.constant 0 : index
    %c0_39 = arith.constant 0 : index
    %105 = vector.load %arg6[%c0_37, %c0_38, %c0_39] : memref<1x128x128xf32, #tpu.memory_space<vmem>>, vector<1x128x128xf32>
    %106 = vector.shape_cast %105 : vector<1x128x128xf32> to vector<128x128xf32>
    %cst_40 = arith.constant dense<0.000000e+00> : vector<16x128xf32>
    %107 = tpu.matmul %104, %106, %cst_40 {dimension_numbers = #tpu.dot_dimension_numbers<[1], [0], [0], [1], [0, 0, 1, 1], [], []>} : vector<16x128xf32>, vector<128x128xf32>, vector<16x128xf32> -> vector<16x128xf32>
    %c0_41 = arith.constant 0 : index
    %c0_42 = arith.constant 0 : index
    %c0_43 = arith.constant 0 : index
    %108 = vector.load %arg7[%c0_41, %c0_42, %c0_43] : memref<1x1x128xf32, #tpu.memory_space<vmem>>, vector<1x1x128xf32>
    %109 = vector.shape_cast %108 : vector<1x1x128xf32> to vector<1x128xf32>
    %110 = vector.broadcast %109 : vector<1x128xf32> to vector<16x128xf32>
    %111 = arith.addf %107, %110 : vector<16x128xf32>
    %112 = arith.addf %4, %111 : vector<16x128xf32>
    %c0_44 = arith.constant 0 : index
    %c0_45 = arith.constant 0 : index
    %c0_46 = arith.constant 0 : index
    %113 = vector.load %arg8[%c0_44, %c0_45, %c0_46] : memref<1x2x128xf32, #tpu.memory_space<vmem>>, vector<1x2x128xf32>
    %114 = vector.shape_cast %113 : vector<1x2x128xf32> to vector<2x128xf32>
    %115 = vector.extract_strided_slice %114 {offsets = [0, 0], sizes = [1, 128], strides = [1, 1]} : vector<2x128xf32> to vector<1x128xf32>
    %116 = vector.extract_strided_slice %114 {offsets = [1, 0], sizes = [1, 128], strides = [1, 1]} : vector<2x128xf32> to vector<1x128xf32>
    %cst_47 = arith.constant dense<0.000000e+00> : vector<16xf32>
    %117 = vector.multi_reduction <add>, %112, %cst_47 [1] : vector<16x128xf32> to vector<16xf32>
    %118 = vector.shape_cast %117 : vector<16xf32> to vector<16x1xf32>
    %cst_48 = arith.constant 1.280000e+02 : f32
    %119 = vector.broadcast %cst_48 : f32 to vector<16x1xf32>
    %120 = arith.divf %118, %119 : vector<16x1xf32>
    %121 = vector.broadcast %120 : vector<16x1xf32> to vector<16x128xf32>
    %122 = arith.subf %112, %121 : vector<16x128xf32>
    %123 = arith.mulf %122, %122 : vector<16x128xf32>
    %cst_49 = arith.constant dense<0.000000e+00> : vector<16xf32>
    %124 = vector.multi_reduction <add>, %123, %cst_49 [1] : vector<16x128xf32> to vector<16xf32>
    %125 = vector.shape_cast %124 : vector<16xf32> to vector<16x1xf32>
    %cst_50 = arith.constant 1.280000e+02 : f32
    %126 = vector.broadcast %cst_50 : f32 to vector<16x1xf32>
    %127 = arith.divf %125, %126 : vector<16x1xf32>
    %cst_51 = arith.constant 9.99999974E-6 : f32
    %128 = vector.broadcast %cst_51 : f32 to vector<16x1xf32>
    %129 = arith.addf %127, %128 : vector<16x1xf32>
    %130 = math.rsqrt %129 : vector<16x1xf32>
    %131 = vector.broadcast %130 : vector<16x1xf32> to vector<16x128xf32>
    %132 = arith.mulf %122, %131 : vector<16x128xf32>
    %133 = vector.broadcast %115 : vector<1x128xf32> to vector<16x128xf32>
    %134 = arith.mulf %132, %133 : vector<16x128xf32>
    %135 = vector.broadcast %116 : vector<1x128xf32> to vector<16x128xf32>
    %136 = arith.addf %134, %135 : vector<16x128xf32>
    %c0_52 = arith.constant 0 : index
    %c0_53 = arith.constant 0 : index
    %c0_54 = arith.constant 0 : index
    %137 = vector.load %arg9[%c0_52, %c0_53, %c0_54] : memref<1x128x256xf32, #tpu.memory_space<vmem>>, vector<1x128x256xf32>
    %138 = vector.shape_cast %137 : vector<1x128x256xf32> to vector<128x256xf32>
    %cst_55 = arith.constant dense<0.000000e+00> : vector<16x256xf32>
    %139 = tpu.matmul %136, %138, %cst_55 {dimension_numbers = #tpu.dot_dimension_numbers<[1], [0], [0], [1], [0, 0, 1, 1], [], []>} : vector<16x128xf32>, vector<128x256xf32>, vector<16x256xf32> -> vector<16x256xf32>
    %c0_56 = arith.constant 0 : index
    %c0_57 = arith.constant 0 : index
    %c0_58 = arith.constant 0 : index
    %140 = vector.load %arg10[%c0_56, %c0_57, %c0_58] : memref<1x1x256xf32, #tpu.memory_space<vmem>>, vector<1x1x256xf32>
    %141 = vector.shape_cast %140 : vector<1x1x256xf32> to vector<1x256xf32>
    %142 = vector.broadcast %141 : vector<1x256xf32> to vector<16x256xf32>
    %143 = arith.addf %139, %142 : vector<16x256xf32>
    %cst_59 = arith.constant 0.000000e+00 : f32
    %144 = vector.broadcast %cst_59 : f32 to vector<16x256xf32>
    %145 = arith.maximumf %143, %144 : vector<16x256xf32>
    %c0_60 = arith.constant 0 : index
    %c0_61 = arith.constant 0 : index
    %c0_62 = arith.constant 0 : index
    %146 = vector.load %arg11[%c0_60, %c0_61, %c0_62] : memref<1x256x128xf32, #tpu.memory_space<vmem>>, vector<1x256x128xf32>
    %147 = vector.shape_cast %146 : vector<1x256x128xf32> to vector<256x128xf32>
    %cst_63 = arith.constant dense<0.000000e+00> : vector<16x128xf32>
    %148 = tpu.matmul %145, %147, %cst_63 {dimension_numbers = #tpu.dot_dimension_numbers<[1], [0], [0], [1], [0, 0, 1, 1], [], []>} : vector<16x256xf32>, vector<256x128xf32>, vector<16x128xf32> -> vector<16x128xf32>
    %c0_64 = arith.constant 0 : index
    %c0_65 = arith.constant 0 : index
    %c0_66 = arith.constant 0 : index
    %149 = vector.load %arg12[%c0_64, %c0_65, %c0_66] : memref<1x1x128xf32, #tpu.memory_space<vmem>>, vector<1x1x128xf32>
    %150 = vector.shape_cast %149 : vector<1x1x128xf32> to vector<1x128xf32>
    %151 = vector.broadcast %150 : vector<1x128xf32> to vector<16x128xf32>
    %152 = arith.addf %148, %151 : vector<16x128xf32>
    %153 = arith.addf %112, %152 : vector<16x128xf32>
    %c0_67 = arith.constant 0 : index
    %c0_68 = arith.constant 0 : index
    %c0_69 = arith.constant 0 : index
    %154 = vector.load %arg13[%c0_67, %c0_68, %c0_69] : memref<1x16x128xf32, #tpu.memory_space<vmem>>, vector<1x16x128xf32>
    %155 = vector.shape_cast %154 : vector<1x16x128xf32> to vector<16x128xf32>
    %156 = vector.shape_cast %153 : vector<16x128xf32> to vector<1x16x128xf32>
    tpu.vector_store %arg13[%c0_67, %c0_68, %c0_69], %156 {strides = array<i32>} : memref<1x16x128xf32, #tpu.memory_space<vmem>>, vector<1x16x128xf32>,
    return
  }
  func.func @transform_0(%arg0: i32, %arg1: i32) -> (i32, i32, i32) {
    %c0_i32 = arith.constant 0 : i32
    %c0_i32_0 = arith.constant 0 : i32
    %c0_i32_1 = arith.constant 0 : i32
    return %arg0, %c0_i32, %c0_i32_0 : i32, i32, i32
  }
  func.func @transform_1(%arg0: i32, %arg1: i32) -> (i32, i32, i32) {
    %c0_i32 = arith.constant 0 : i32
    %c0_i32_0 = arith.constant 0 : i32
    %c0_i32_1 = arith.constant 0 : i32
    return %arg1, %c0_i32, %c0_i32_0 : i32, i32, i32
  }
  func.func @transform_2(%arg0: i32, %arg1: i32) -> (i32, i32, i32) {
    %c0_i32 = arith.constant 0 : i32
    %c0_i32_0 = arith.constant 0 : i32
    %c0_i32_1 = arith.constant 0 : i32
    return %arg1, %c0_i32, %c0_i32_0 : i32, i32, i32
  }
  func.func @transform_3(%arg0: i32, %arg1: i32) -> (i32, i32, i32) {
    %c0_i32 = arith.constant 0 : i32
    %c0_i32_0 = arith.constant 0 : i32
    %c0_i32_1 = arith.constant 0 : i32
    return %arg1, %c0_i32, %c0_i32_0 : i32, i32, i32
  }
  func.func @transform_4(%arg0: i32, %arg1: i32) -> (i32, i32, i32) {
    %c0_i32 = arith.constant 0 : i32
    %c0_i32_0 = arith.constant 0 : i32
    %c0_i32_1 = arith.constant 0 : i32
    return %arg1, %c0_i32, %c0_i32_0 : i32, i32, i32
  }
  func.func @transform_5(%arg0: i32, %arg1: i32) -> (i32, i32, i32) {
    %c0_i32 = arith.constant 0 : i32
    %c0_i32_0 = arith.constant 0 : i32
    %c0_i32_1 = arith.constant 0 : i32
    return %arg1, %c0_i32, %c0_i32_0 : i32, i32, i32
  }
  func.func @transform_6(%arg0: i32, %arg1: i32) -> (i32, i32, i32) {
    %c0_i32 = arith.constant 0 : i32
    %c0_i32_0 = arith.constant 0 : i32
    %c0_i32_1 = arith.constant 0 : i32
    return %arg1, %c0_i32, %c0_i32_0 : i32, i32, i32
  }
  func.func @transform_7(%arg0: i32, %arg1: i32) -> (i32, i32, i32) {
    %c0_i32 = arith.constant 0 : i32
    %c0_i32_0 = arith.constant 0 : i32
    %c0_i32_1 = arith.constant 0 : i32
    return %arg1, %c0_i32, %c0_i32_0 : i32, i32, i32
  }
  func.func @transform_8(%arg0: i32, %arg1: i32) -> (i32, i32, i32) {
    %c0_i32 = arith.constant 0 : i32
    %c0_i32_0 = arith.constant 0 : i32
    %c0_i32_1 = arith.constant 0 : i32
    return %arg1, %c0_i32, %c0_i32_0 : i32, i32, i32
  }
  func.func @transform_9(%arg0: i32, %arg1: i32) -> (i32, i32, i32) {
    %c0_i32 = arith.constant 0 : i32
    %c0_i32_0 = arith.constant 0 : i32
    %c0_i32_1 = arith.constant 0 : i32
    return %arg1, %c0_i32, %c0_i32_0 : i32, i32, i32
  }
  func.func @transform_10(%arg0: i32, %arg1: i32) -> (i32, i32, i32) {
    %c0_i32 = arith.constant 0 : i32
    %c0_i32_0 = arith.constant 0 : i32
    %c0_i32_1 = arith.constant 0 : i32
    return %arg1, %c0_i32, %c0_i32_0 : i32, i32, i32
  }
  func.func @transform_11(%arg0: i32, %arg1: i32) -> (i32, i32, i32) {
    %c0_i32 = arith.constant 0 : i32
    %c0_i32_0 = arith.constant 0 : i32
    %c0_i32_1 = arith.constant 0 : i32
    return %arg0, %c0_i32, %c0_i32_0 : i32, i32, i32
  }
}

</mosaic_0001>

<bundles_post_ra>
// kernel: tpu_custom_call.1
= control target key start
LH: loop header
LB: loop body
LE: loop exit
PB: predicated region body
PF: predicated region fallthrough
CT: control target
= control target key end

     0   :  { %s3345_s0 = inlined_call_operand.hbm [shape: f32[2,16,128], index: 0, kind: input, shape index: {}]   ;;  %s3346_s1 = inlined_call_operand.hbm [shape: f32[2,2,128], index: 1, kind: input, shape index: {}]   ;;  %s3347_s2 = inlined_call_operand.hbm [shape: f32[2,128,384], index: 2, kind: input, shape index: {}]   ;;  %s3348_s3 = inlined_call_operand.hbm [shape: f32[2,1,384], index: 3, kind: input, shape index: {}]   ;;  %s3349_s4 = inlined_call_operand.hbm [shape: f32[2,128,128], index: 4, kind: input, shape index: {}]   ;;  %s3350_s5 = inlined_call_operand.hbm [shape: f32[2,1,128], index: 5, kind: input, shape index: {}]   ;;  %s3351_s6 = inlined_call_operand.vmem [shape: f32[2,2,128], index: 6, kind: input, shape index: {}]   ;;  %s3352_s7 = inlined_call_operand.hbm [shape: f32[2,128,256], index: 7, kind: input, shape index: {}]   ;;  %s3353_s8 = inlined_call_operand.hbm [shape: f32[2,1,256], index: 8, kind: input, shape index: {}]   ;;  %s3354_s9 = inlined_call_operand.hbm [shape: f32[2,256,128], index: 9, kind: input, shape index: {}]   ;;  %s3355_s10 = inlined_call_operand.vmem [shape: f32[2,1,128], index: 10, kind: input, shape index: {}]   ;;  %s3356_s11 = inlined_call_operand.hbm [shape: f32[2,16,128], index: 11, kind: output, shape index: {}]  }
   0x1   :  { %3374 = sst [smem:[#allocation35_spill]] %s3345_s0 }
   0x2   :  { %3375 = sst [smem:[#allocation36_spill]] %s3346_s1 }
   0x3   :  { %3376 = sst [smem:[#allocation37_spill]] %s3347_s2 }
   0x4   :  { %3377 = sst [smem:[#allocation38_spill]] %s3348_s3 }
   0x5   :  { %3378 = sst [smem:[#allocation39_spill]] %s3350_s5 }
   0x6   :  { %3379 = sst [smem:[#allocation40_spill]] %s3351_s6 }
   0x7   :  { %3380 = sst [smem:[#allocation41_spill]] %s3352_s7 }
   0x8   :  { %3381 = sst [smem:[#allocation42_spill]] %s3353_s8 }
   0x9   :  { %3382 = sst [smem:[#allocation43_spill]] %s3354_s9 }
   0xa   :  { %3383 = sst [smem:[#allocation44_spill]] %s3355_s10 }
   0xb   :  { %3384 = sst [smem:[#allocation45_spill]] %s3356_s11 }
   0xc   :  { %16 = vsyncpa [#allocation3], 0 }
   0xd   :  { %18 = vsyncpa [#allocation3 + $0x1], 0 }
   0xe   :  { %19 = vsyncpa [#allocation6], 0 }
   0xf   :  { %21 = vsyncpa [#allocation6 + $0x1], 0 }
  0x10   :  { %22 = vsyncpa [#allocation9], 0 }
  0x11   :  { %24 = vsyncpa [#allocation9 + $0x1], 0 }
  0x12   :  { %25 = vsyncpa [#allocation12], 0 }
  0x13   :  { %27 = vsyncpa [#allocation12 + $0x1], 0 }
  0x14   :  { %28 = vsyncpa [#allocation15], 0 }
  0x15   :  { %30 = vsyncpa [#allocation15 + $0x1], 0 }
  0x16   :  { %31 = vsyncpa [#allocation4], 0 }
  0x17   :  { %33 = vsyncpa [#allocation4 + $0x1], 0  ;;  %s2686_s17 = smov 0   ;;  %s2688_s18 = smov 0  }
  0x18   :  { %s2690_s19 = smov 0   ;;  %s2692_s20 = smov 0  }
  0x19   :  { %s2694_s21 = smov 0   ;;  %s2696_s22 = smov 0  }
  0x1a   :  { %s2698_s23 = smov 0   ;;  %s2700_s24 = smov 0  }
  0x1b   :  { %s2702_s25 = smov 0   ;;  %s2704_s26 = smov 0  }
  0x1c   :  { %s2706_s27 = smov 0  }
  0x1d LB: > { %3385 = sst [smem:[#allocation24_spill]] %s2580_s19  ;;  %p66_p0 = scmp.eq.s32.totalorder %s2612_s27, 0  ;;  %s2612_s27 = sphi %s2706_s27, %s39_s27   ;;  %s2608_s26 = sphi %s2704_s26, %s3442_s26   ;;  %s2604_s25 = sphi %s2702_s25, %s3441_s25   ;;  %s2600_s24 = sphi %s2700_s24, %s3433_s24   ;;  %s2596_s23 = sphi %s2698_s23, %s3440_s23   ;;  %s2592_s22 = sphi %s2696_s22, %s3432_s22   ;;  %s2588_s21 = sphi %s2694_s21, %s3439_s21   ;;  %s2584_s20 = sphi %s2692_s20, %s3438_s20   ;;  %s2580_s19 = sphi %s2690_s19, %s3430_s19   ;;  %s2576_s18 = sphi %s2688_s18, %s3437_s18   ;;  %s2572_s17 = sphi %s2686_s17, %s3436_s17  }
  0x1e   : > { %3386 = sst [smem:[#allocation25_spill]] %s2592_s22  ;;  %p91_p1 = scmp.ne.s32.totalorder %s2580_s19, %s2576_s18 }
  0x1f   : > { %3387 = sst [smem:[#allocation26_spill]] %s2596_s23  ;;  %p97_p2 = scmp.ne.s32.totalorder %s2576_s18, %s2572_s17 }
  0x20   : > { %3388 = sst [smem:[#allocation27_spill]] %s2600_s24  ;;  %p3365_p3 = scmp.lt.s32.totalorder %s2612_s27, 4 }
  0x21   : > { %3389 = sst [smem:[#allocation28_spill]] %s2608_s26  ;;  %p93_p4 = por %p91_p1, %p66_p0 }
  0x22   : > { %s2751_s29 = sand.u32 1, %s2612_s27   ;;  %s2754_s30 = sand.u32 1, %s2580_s19  }
  0x23   : > { %s3358_s12 = sshll.u32 %s2754_s30, 1  ;;  %s3359_s13 = sshll.u32 %s2604_s25, 1 }
  0x24   : > { %s3390_s1 = sld [smem:[#allocation36_spill]]  ;;  %s407_s11 = scalar_lea.vmem [#allocation5], %s3358_s12 }
  0x25   : > { %s415_s24 = sshll.u32 %s407_s11, 4  ;;  %p2767_p5 = pnand %p3365_p3, %p93_p4  ;;  %s416_s24 = int_to_ptr.vmem [resolvable:$true] %s415_s24 }
  0x26   : > { %p1941_p6 = scmp.ge.s32.totalorder %s2612_s27, 1  ;;  %p576_p7 = scmp.lt.s32.totalorder %s2612_s27, 5 }
  0x27   : > { %s1987_s14 = smul.u32 3, %s2754_s30  ;;  %s3361_s15 = scalar_lea.sflag [#allocation6], %s2751_s29 }
  0x28   : > { %p2779_p8 = pnand %p1941_p6, %p576_p7  ;;  %s3394_s3 = sld [smem:[#allocation38_spill]] }
  0x29   : > { %s448_s12 = scalar_lea.vmem [#allocation8], %s1987_s14  ;;  %s3395_s5 = sld [smem:[#allocation39_spill]] }
  0x2a   : > { %s411_s16 = scalar_lea.hbm %s3390_s1, %s3359_s13  ;;  %s456_s13 = sshll.u32 %s448_s12, 4  ;;  %s457_s13 = int_to_ptr.vmem [resolvable:$true] %s456_s13 }
  0x2b   : > { %s413_s28 = sshll.u32 %s411_s16, 4  ;;  %s1988_s16 = smul.u32 3, %s2604_s25  ;;  %s414_s28 = int_to_ptr.hbm [resolvable:$true] %s413_s28 }
  0x2c   : > { %2017 = dma.hbm_to_vmem [thread:$0]  (!%p2767_p5), %s414_s28, 32, %s416_s24, %s3361_s15  }
  0x2d   : > { %s3392_s11 = scalar_select %p2779_p8, 1, 0 }
  0x2e   : > { %s452_s23 = scalar_lea.hbm %s3394_s3, %s1988_s16  ;;  %s488_s1 = scalar_lea.vmem [#allocation11], %s2754_s30 }
  0x2f   : > { %3393 = sst [smem:[#allocation29_spill]] %s3392_s11  ;;  %s454_s9 = sshll.u32 %s452_s23, 4  ;;  %s455_s9 = int_to_ptr.hbm [resolvable:$true] %s454_s9 }
  0x30   : > { %s491_s28 = scalar_lea.hbm %s3395_s5, %s2604_s25  ;;  %s3366_s11 = scalar_lea.sflag [#allocation9], %s2751_s29 }
  0x31   : > { %s493_s15 = sshll.u32 %s491_s28, 4  ;;  %s495_s10 = sshll.u32 %s488_s1, 4  ;;  %s494_s15 = int_to_ptr.hbm [resolvable:$true] %s493_s15  ;;  %s496_s10 = int_to_ptr.vmem [resolvable:$true] %s495_s10 }
  0x32   : > { %2023 = dma.hbm_to_vmem [thread:$0]  (!%p2767_p5), %s455_s9, 48, %s457_s13, %s3366_s11  }
  0x33   : > { %s3364_s7 = scalar_lea.sflag [#allocation12], %s2751_s29  ;;  %s3396_s23 = sshll.u32 %s2604_s25, 1 }
  0x34   : > { %2029 = dma.hbm_to_vmem [thread:$0]  (!%p2767_p5), %s494_s15, 16, %s496_s10, %s3364_s7  }
  0x35   : > { %s3397_s8 = sld [smem:[#allocation42_spill]]  ;;  %s3398_s16 = sshll.u32 %s2754_s30, 1 }
  0x36   : > { %s535_s24 = scalar_lea.vmem [#allocation14], %s3398_s16  ;;  %s3363_s1 = scalar_lea.sflag [#allocation15], %s2751_s29 }
  0x37   : > { %s543_s28 = sshll.u32 %s535_s24, 4  ;;  %s2815_s15 = sadd.s32 4294967295, %s2612_s27   ;;  %s544_s28 = int_to_ptr.vmem [resolvable:$true] %s543_s28 }
  0x38   : > { %s1921_s10 = sadd.s32 4294967294, %s2612_s27   ;;  %s51_s12 = sadd.s32 1, %s2608_s26 }
  0x39   : > { %s58_s14 = sadd.s32 1, %s2592_s22  ;;  %p65_p10 = scmp.ne.s32.totalorder %s2592_s22, %s2588_s21 }
  0x3a   : > { %p71_p11 = scmp.ne.s32.totalorder %s2588_s21, %s2584_s20  ;;  %p72_p13 = scmp.eq.s32.totalorder %s2815_s15, 0 }
  0x3b   : > { %s539_s9 = scalar_lea.hbm %s3397_s8, %s3396_s23  ;;  %s48_s23 = sadd.s32 1, %s2604_s25 }
  0x3c   : > { %s541_s13 = sshll.u32 %s539_s9, 4  ;;  %p49_p9 = scmp.ge.s32.totalorder %s48_s23, 2  ;;  %s542_s13 = int_to_ptr.hbm [resolvable:$true] %s541_s13 }
  0x3d   : > { %2035 = dma.hbm_to_vmem [thread:$0]  (!%p2767_p5), %s542_s13, 32, %s544_s28, %s3363_s1  }
  0x3e   : > { %s3444_s23 = smov (%p49_p9, %s48_s23), 0  ;;  %s3446_s12 = smov (!%p49_p9, %s51_s12), %s2608_s26 }
  0x3f   : > { %3399 = sst [smem:[#allocation30_spill]] %s3444_s23  ;;  %p2833_p12 = por %p66_p0, %p65_p10 }
  0x40   : > { %p53_p1 = scmp.ge.s32.totalorder %s3446_s12, 2  ;;  %s81_s13 = ssub.s32 %s2604_s25, %s3444_s23 }
  0x41   : > { %p2843_p4 = por %p72_p13, %p71_p11  ;;  %p82_p6 = scmp.eq.s32.totalorder %s81_s13, 0 }
  0x42   : > { %s3448_s12 = smov (%p53_p1, %s3446_s12), 0  ;;  %s3403_s24 = sadd.s32 1, %s2580_s19 }
  0x43   : > { %3402 = sst [smem:[#allocation31_spill]] %s3448_s12  ;;  %s55_s1 = ssub.s32 %s2608_s26, %s3448_s12 }
  0x44   : > { %s2852_s28 = scalar_select %p82_p6, %s2580_s19, %s3403_s24  }
  0x45   : > { %p2859_p0 = por %p97_p2, %p72_p13  ;;  %p56_p7 = scmp.eq.s32.totalorder %s55_s1, 0 }
  0x46   : > { %3404 = sst [smem:[#allocation32_spill]] %s2852_s28  ;;  %p355_p9 = scmp.eq.s32.totalorder %s2815_s15, 3 }
  0x47   : > { %p361_p3 = scmp.eq.s32.totalorder %s1921_s10, 3  ;;  %s381_s11 = sand.u32 1, %s2592_s22  }
  0x48   : > { %s2866_s13 = scalar_select %p56_p7, %s2592_s22, %s58_s14  }
  0x49   : > { %p2871_p1 = por %p355_p9, %p65_p10  ;;  %p2878_p2 = por %p361_p3, %p71_p11 }
  0x4a   : > { %3406 = sst [smem:[#allocation33_spill]] %s2866_s13  ;;  %s1924_s24 = sshll.u32 %s381_s11, 4 }
  0x4b   : > { %s3408_s17 = scalar_select %p2878_p2, 1, 0 }
  0x4c   : > { %s1980_s5 = sshll.u32 %s2608_s26, 4  ;;  %s3410_s0 = sld [smem:[#allocation35_spill]] }
  0x4d   : > { %3409 = sst [smem:[#allocation34_spill]] %s3408_s17  ;;  %s385_s12 = scalar_lea.vmem [#allocation2], %s1924_s24 }
  0x4e   : > { %s393_s14 = sshll.u32 %s385_s12, 4  ;;  %p3411_p10 = scmp.lt.s32.totalorder %s2612_s27, 4  ;;  %s394_s14 = int_to_ptr.vmem [resolvable:$true] %s393_s14 }
  0x4f   : > { %s1985_s13 = smul.u32 384, %s2754_s30  ;;  %s382_s22 = scalar_lea.sflag [#allocation3], %s381_s11 }
  0x50   : > { %p2012_p13 = pnand %p3411_p10, %p2833_p12  ;;  %s3373_s28 = smov 128  }
  0x51   : > { %s2615_s26 = smov 8   ;;  %s426_s8 = scalar_lea.vmem [#allocation7], %s1985_s13 }
  0x52   : > { %s390_s10 = scalar_lea.hbm %s3410_s0, %s1980_s5  ;;  %s1986_s5 = smul.u32 384, %s2604_s25 }
  0x53   : > { %s391_s23 = sshll.u32 %s390_s10, 4  ;;  %s434_s12 = sshll.u32 %s426_s8, 4  ;;  %s392_s23 = int_to_ptr.hbm [resolvable:$true] %s391_s23  ;;  %s435_s12 = int_to_ptr.vmem [resolvable:$true] %s434_s12 }
  0x54   : > { %2014 = dma.hbm_to_vmem [thread:$0]  (!%p2012_p13), %s392_s23, 256, %s394_s14, %s382_s22, %s3373_s28, %s3373_s28, %s2615_s26  }
  0x55   : > { %s3412_s2 = sld [smem:[#allocation37_spill]]  ;;  %s1930_s11 = sshll.u32 %s2754_s30, 7 }
  0x56   : > { %s2616_s0 = smov 384   ;;  %s2617_s19 = smov 24  }
  0x57   : > { %s3413_s17 = scalar_lea.sflag [#allocation6], %s2751_s29  ;;  %s1981_s22 = sshll.u32 %s2604_s25, 7 }
  0x58   : > { %s472_s14 = scalar_lea.hbm %s3349_s4, %s1981_s22  ;;  %s467_s8 = scalar_lea.vmem [#allocation10], %s1930_s11 }
  0x59   : > { %s473_s24 = sshll.u32 %s472_s14, 4  ;;  %s1933_s1 = sshll.u32 %s2754_s30, 8  ;;  %s474_s24 = int_to_ptr.hbm [resolvable:$true] %s473_s24 }
  0x5a   : > { %s513_s11 = scalar_lea.vmem [#allocation13], %s1933_s1  ;;  %s2618_s13 = smov 256  }
  0x5b   : > { %s431_s9 = scalar_lea.hbm %s3412_s2, %s1986_s5  ;;  %s475_s5 = sshll.u32 %s467_s8, 4  ;;  %s476_s5 = int_to_ptr.vmem [resolvable:$true] %s475_s5 }
  0x5c   : > { %s432_s10 = sshll.u32 %s431_s9, 4  ;;  %s3414_s9 = scalar_lea.sflag [#allocation9], %s2751_s29  ;;  %s433_s10 = int_to_ptr.hbm [resolvable:$true] %s432_s10 }
  0x5d   : > { %2020 = dma.hbm_to_vmem [thread:$0]  (!%p2767_p5), %s433_s10, 6144, %s435_s12, %s3413_s17, %s2616_s0, %s2616_s0, %s2617_s19  }
  0x5e   : > { %2026 = dma.hbm_to_vmem [thread:$0]  (!%p2767_p5), %s474_s24, 2048, %s476_s5, %s3414_s9, %s3373_s28, %s3373_s28, %s2615_s26  }
  0x5f   : > { %s1982_s0 = sshll.u32 %s2604_s25, 8  ;;  %s3415_s12 = sld [smem:[#allocation41_spill]] }
  0x60   : > { %s521_s22 = sshll.u32 %s513_s11, 4  ;;  %s2619_s30 = smov 16   ;;  %s522_s22 = int_to_ptr.vmem [resolvable:$true] %s521_s22 }
  0x61   : > { %s3416_s14 = scalar_lea.sflag [#allocation12], %s2751_s29  ;;  %s3417_s5 = sld [smem:[#allocation43_spill]] }
  0x62   : > { %s554_s9 = scalar_lea.vmem [#allocation16], %s1933_s1  ;;  %s3418_s17 = smov 128  }
  0x63   : > { %s562_s28 = sshll.u32 %s554_s9, 4  ;;  %s2936_s11 = sand.u32 (!%p2779_p8), 1, %s2588_s21   ;;  %s563_s28 = int_to_ptr.vmem [resolvable:$true] %s562_s28 }
  0x64   : > { %s1942_s2 = sshll.u32 (!%p2779_p8), %s2936_s11, 4  ;;  %s583_s1 = scalar_lea.sflag (!%p2779_p8), [#allocation3], %s2936_s11 }
  0x65   : > { %s518_s10 = scalar_lea.hbm %s3415_s12, %s1982_s0  ;;  %s3419_s12 = scalar_lea.sflag [#allocation15], %s2751_s29 }
  0x66   : > { %s519_s23 = sshll.u32 %s518_s10, 4  ;;  %580 = sbr.rel (%p2779_p8) target bundleno = 2309 (0x905), region = 64  ;;  %s520_s23 = int_to_ptr.hbm [resolvable:$true] %s519_s23 }
  0x67   : > { %2032 = dma.hbm_to_vmem [thread:$0]  (!%p2767_p5), %s520_s23, 4096, %s522_s22, %s3416_s14, %s2618_s13, %s2618_s13, %s2619_s30  }
  0x68   : > { %s559_s24 = scalar_lea.hbm %s3417_s5, %s1982_s0  ;;  %s2942_s0 = scalar_lea.vmem (!%p2779_p8), [#allocation2], %s1942_s2 }
  0x69   : > { %s560_s19 = sshll.u32 %s559_s24, 4  ;;  %s561_s19 = int_to_ptr.hbm [resolvable:$true] %s560_s19 }
  0x6a   : > { %2038 = dma.hbm_to_vmem [thread:$0]  (!%p2767_p5), %s561_s19, 4096, %s563_s28, %s3419_s12, %s3418_s17, %s3418_s17, %s2615_s26  }
  0x6b   : > { %2547 = dma.done.wait (%p2843_p4), %s583_s1, 256  }
  0x6c   : > { %2549 = vsyncadd (%p2843_p4), %s583_s1, 4294967040  ;;  %s592_s6 = sand.u32 1, %s2815_s15   ;;  %s2950_s26 = sand.u32 1, %s2576_s18  }
  0x6d   : > { %s1943_s29 = sshll.u32 %s2950_s26, 1  ;;  %s593_s28 = scalar_lea.sflag [#allocation6], %s592_s6 }
  0x6e   : > { %s2953_s22 = scalar_lea.vmem [#allocation5], %s1943_s29 }
  0x6f   : > { %2551 = dma.done.wait (%p2859_p0), %s593_s28, 6176  }
  0x70   : > { %2553 = vsyncadd (%p2859_p0), %s593_s28, 4294961120  ;;  %s1989_s16 = smul.u32 384, %s2950_s26  ;;  %s613_s15 = scalar_lea.sflag [#allocation9], %s592_s6 }
  0x71   : > { %s1990_s23 = smul.u32 3, %s2950_s26 }
  0x72   : > { %s2961_s13 = scalar_lea.vmem [#allocation7], %s1989_s16 }
  0x73   : > { %s2963_s30 = scalar_lea.vmem [#allocation8], %s1990_s23 }
  0x74   : > { %2555 = dma.done.wait (%p2859_p0), %s613_s15, 2096  }
  0x75   : > { %2557 = vsyncadd (%p2859_p0), %s613_s15, 4294965200  ;;  %s1944_s14 = sshll.u32 %s2950_s26, 7  ;;  %s633_s5 = scalar_lea.sflag [#allocation12], %s592_s6 }
  0x76   : > { %s2970_s8 = scalar_lea.vmem [#allocation10], %s1944_s14 }
  0x77   : > { %2559 = dma.done.wait (%p2859_p0), %s633_s5, 4112  }
  0x78   : > { %2561 = vsyncadd (%p2859_p0), %s633_s5, 4294963184  ;;  %s1945_s9 = sshll.u32 %s2950_s26, 8  ;;  %s652_s17 = scalar_lea.sflag [#allocation15], %s592_s6 }
  0x79   : > { %s2978_s19 = scalar_lea.vmem [#allocation13], %s1945_s9  ;;  %s2980_s12 = scalar_lea.vmem [#allocation14], %s1943_s29 }
  0x7a   : > { %2563 = dma.done.wait (%p2859_p0), %s652_s17, 4128  }
  0x7b   : > { %2565 = vsyncadd (%p2859_p0), %s652_s17, 4294963168  ;;  %s3421_s10 = sld [smem:[#allocation26_spill]]  ;;  %s3000_s7 = scalar_lea.vmem [#allocation16], %s1945_s9 }
  0x7c   : > { %s3422_s15 = sld [smem:[#allocation44_spill]]  ;;  %s3004_s17 = scalar_lea.vmem [#allocation17], %s1942_s2 }
  0x7d   : > { %s3423_s5 = sld [smem:[#allocation40_spill]] }
  0x81   : > { %p751_p3 = scmp.lt.s32.totalorder %s3421_s10, 1  ;;  %p1950_p5 = scmp.ne.s32.totalorder %s3421_s10, 0 }
  0x83   : > { %s2988_s1 = scalar_select %p751_p3, %s3421_s10, 1 }
  0x84   : > { %761 = sbr.rel (%p1950_p5) target bundleno = 140 (0x8c), region = 104 }
  0x85   : > { %s1949_s28 = sshll.u32 %s2988_s1, 1  ;;  %s757_s6 = scalar_lea.vmem %s3422_s15, %s2988_s1 }
  0x86   : > { %s2998_s24 = scalar_lea.vmem %s3423_s5, %s1949_s28 }
  0x89   : > { %v762_v0 = vld [vmem:[%s2942_s0] sm:$0xff]  ;;  %v763_v1 = vld [vmem:[%s2942_s0 + $0x8] sm:$0xff] }
  0x8a   : > { %764 = vst [vmem:[%s3004_s17] sm:$0xff] %v762_v0 }
  0x8b   : > { %765 = vst [vmem:[%s3004_s17 + $0x8] sm:$0xff] %v763_v1 }
  0x8c PF: > { %v2620_v4 = vmov 128.0   ;;  %v867_v7 = vld [vmem:[%s2961_s13 + $0x168] sm:$0xff]  ;;  %v868_v8 = vld [vmem:[%s2961_s13 + $0x170] sm:$0xff]  ;;  %v869_v9 = vld [vmem:[%s2961_s13 + $0x178] sm:$0xff]  ;;  %s2621_s2 = smov 96   ;;  %vm947_vm7 = vcmask 261120  }
  0x8d   : > { %2162 = vrcp.f32 %v2620_v4  ;;  %878 = vmatpush.msra.mxu0 %v867_v7  ;;  %901 = vmatpush.msra.mxu1 %v868_v8  ;;  %v864_v10 = vld [vmem:[%s2961_s13 + $0x150] sm:$0xff]  ;;  %v865_v11 = vld [vmem:[%s2961_s13 + $0x158] sm:$0xff]  ;;  %v866_v12 = vld [vmem:[%s2961_s13 + $0x160] sm:$0xff]  ;;  %s2622_s0 = smov 64   ;;  %vm985_vm8 = vcmask 130048   ;;  %vm1359_vm9 = vcmask 523264  }
  0x8e   : > { %924 = vmatpush.msra.mxu2 %v869_v9  ;;  %v861_v25 = vld [vmem:[%s2961_s13 + $0x138] sm:$0xff]  ;;  %v862_v26 = vld [vmem:[%s2961_s13 + $0x140] sm:$0xff]  ;;  %v863_v27 = vld [vmem:[%s2961_s13 + $0x148] sm:$0xff]  ;;  %vm1362_vm10 = vcmask 785408   ;;  %s3427_s10 = sld [smem:[#allocation45_spill]]  ;;  %s1644_s16 = sshll.u32 %s3004_s17, 4  ;;  %s1645_s16 = int_to_ptr.vmem [resolvable:$true] %s1644_s16 }
  0x8f   : > { %879 = vmatpush.msra.mxu0 %v864_v10  ;;  %902 = vmatpush.msra.mxu1 %v865_v11  ;;  %v858_v28 = vld [vmem:[%s2961_s13 + $0x120] sm:$0xff]  ;;  %v859_v29 = vld [vmem:[%s2961_s13 + $0x128] sm:$0xff]  ;;  %v860_v30 = vld [vmem:[%s2961_s13 + $0x130] sm:$0xff]  ;;  %s1632_s23 = scalar_lea.sflag [#allocation4], %s2936_s11 }
  0x90   : > { %925 = vmatpush.msra.mxu2 %v866_v12  ;;  %v855_v31 = vld [vmem:[%s2961_s13 + $0x108] sm:$0xff]  ;;  %v856_v32 = vld [vmem:[%s2961_s13 + $0x110] sm:$0xff]  ;;  %v857_v33 = vld [vmem:[%s2961_s13 + $0x118] sm:$0xff] }
  0x91   : > { %v3012_v2 = vld [vmem:[%s3004_s17] sm:$0xff]  ;;  %880 = vmatpush.msra.mxu0 %v861_v25  ;;  %903 = vmatpush.msra.mxu1 %v862_v26 }
  0x92   : > { %769 = vadd.xlane.f32.xlu0 %v3012_v2  ;;  %v3016_v3 = vld [vmem:[%s3004_s17 + $0x8] sm:$0xff]  ;;  %926 = vmatpush.msra.mxu2 %v863_v27 }
  0x93   : > { %v2163_v5 = vpop.eup %2162  ;;  %881 = vmatpush.msra.mxu0 %v858_v28  ;;  %904 = vmatpush.msra.mxu1 %v859_v29  ;;  %v852_v34 = vld [vmem:[%s2961_s13 + $0xf0] sm:$0xff]  ;;  %v853_v35 = vld [vmem:[%s2961_s13 + $0xf8] sm:$0xff]  ;;  %v854_v36 = vld [vmem:[%s2961_s13 + $0x100] sm:$0xff] }
  0x94   : > { %v774_v6 = vmul.f32 128.0, %v2163_v5  ;;  %vm778_vm0 = vweird.f32 %v2163_v5  ;;  %927 = vmatpush.msra.mxu2 %v860_v30  ;;  %v849_v37 = vld [vmem:[%s2961_s13 + $0xd8] sm:$0xff]  ;;  %v850_v38 = vld [vmem:[%s2961_s13 + $0xe0] sm:$0xff]  ;;  %v851_v39 = vld [vmem:[%s2961_s13 + $0xe8] sm:$0xff]  ;;  %s2494_s5 = scalar_lea.hbm %s3427_s10, 32 }
  0x95   : > { %882 = vmatpush.msra.mxu0 %v855_v31  ;;  %905 = vmatpush.msra.mxu1 %v856_v32  ;;  %v846_v40 = vld [vmem:[%s2961_s13 + $0xc0] sm:$0xff]  ;;  %v847_v41 = vld [vmem:[%s2961_s13 + $0xc8] sm:$0xff]  ;;  %v848_v42 = vld [vmem:[%s2961_s13 + $0xd0] sm:$0xff] }
  0x96   : > { %v775_v13 = vsub.f32 1.0, %v774_v6  ;;  %928 = vmatpush.msra.mxu2 %v857_v33  ;;  %v843_v43 = vld [vmem:[%s2961_s13 + $0xa8] sm:$0xff]  ;;  %v844_v44 = vld [vmem:[%s2961_s13 + $0xb0] sm:$0xff]  ;;  %v845_v45 = vld [vmem:[%s2961_s13 + $0xb8] sm:$0xff] }
  0x97   : > { %883 = vmatpush.msra.mxu0 %v852_v34  ;;  %906 = vmatpush.msra.mxu1 %v853_v35  ;;  %v840_v46 = vld [vmem:[%s2961_s13 + $0x90] sm:$0xff]  ;;  %v841_v47 = vld [vmem:[%s2961_s13 + $0x98] sm:$0xff]  ;;  %v842_v48 = vld [vmem:[%s2961_s13 + $0xa0] sm:$0xff] }
  0x98   : > { %v776_v14 = vmul.f32 %v2163_v5, %v775_v13  ;;  %929 = vmatpush.msra.mxu2 %v854_v36  ;;  %v837_v49 = vld [vmem:[%s2961_s13 + $0x78] sm:$0xff]  ;;  %v838_v50 = vld [vmem:[%s2961_s13 + $0x80] sm:$0xff]  ;;  %v839_v51 = vld [vmem:[%s2961_s13 + $0x88] sm:$0xff] }
  0x99   : > { %884 = vmatpush.msra.mxu0 %v849_v37  ;;  %907 = vmatpush.msra.mxu1 %v850_v38  ;;  %v834_v52 = vld [vmem:[%s2961_s13 + $0x60] sm:$0xff]  ;;  %v835_v53 = vld [vmem:[%s2961_s13 + $0x68] sm:$0xff]  ;;  %v836_v54 = vld [vmem:[%s2961_s13 + $0x70] sm:$0xff] }
  0x9a   : > { %771 = vadd.xlane.f32.xlu0 %v3016_v3  ;;  %v777_v15 = vadd.f32 %v2163_v5, %v776_v14  ;;  %930 = vmatpush.msra.mxu2 %v851_v39  ;;  %v831_v55 = vld [vmem:[%s2961_s13 + $0x48] sm:$0xff]  ;;  %v832_v56 = vld [vmem:[%s2961_s13 + $0x50] sm:$0xff]  ;;  %v833_v57 = vld [vmem:[%s2961_s13 + $0x58] sm:$0xff] }
  0x9b   : > { %885 = vmatpush.msra.mxu0 %v846_v40  ;;  %908 = vmatpush.msra.mxu1 %v847_v41  ;;  %v828_v58 = vld [vmem:[%s2961_s13 + $0x30] sm:$0xff]  ;;  %v829_v59 = vld [vmem:[%s2961_s13 + $0x38] sm:$0xff]  ;;  %v830_v60 = vld [vmem:[%s2961_s13 + $0x40] sm:$0xff] }
  0x9c   : > { %v3025_v16 = vsel %vm778_vm0, %v2163_v5, %v777_v15  ;;  %931 = vmatpush.msra.mxu2 %v848_v42  ;;  %v825_v61 = vld [vmem:[%s2961_s13 + $0x18] sm:$0xff]  ;;  %v826_v62 = vld [vmem:[%s2961_s13 + $0x20] sm:$0xff]  ;;  %v827_v63 = vld [vmem:[%s2961_s13 + $0x28] sm:$0xff] }
  0x9d   : > { %886 = vmatpush.msra.mxu0 %v843_v43  ;;  %909 = vmatpush.msra.mxu1 %v844_v44  ;;  %v822_v0 = vld [vmem:[%s2961_s13] sm:$0xff]  ;;  %v823_v1 = vld [vmem:[%s2961_s13 + $0x8] sm:$0xff]  ;;  %v824_v4 = vld [vmem:[%s2961_s13 + $0x10] sm:$0xff]  ;;  %s3424_s13 = scalar_lea.vmem [#allocation11], %s2950_s26  ;;  %s3425_s26 = sld [smem:[#allocation27_spill]] }
  0x9e   : > { %932 = vmatpush.msra.mxu2 %v845_v45 }
  0x9f   : > { %887 = vmatpush.msra.mxu0 %v840_v46  ;;  %910 = vmatpush.msra.mxu1 %v841_v47 }
  0xa0   : > { %933 = vmatpush.msra.mxu2 %v842_v48 }
  0xa1   : > { %888 = vmatpush.msra.mxu0 %v837_v49  ;;  %911 = vmatpush.msra.mxu1 %v838_v50 }
  0xa2   : > { %934 = vmatpush.msra.mxu2 %v839_v51 }
  0xa3   : > { %889 = vmatpush.msra.mxu0 %v834_v52  ;;  %912 = vmatpush.msra.mxu1 %v835_v53  ;;  %s1984_s9 = sshll.u32 %s3425_s26, 4 }
  0xa4   : > { %935 = vmatpush.msra.mxu2 %v836_v54  ;;  %s1643_s28 = scalar_lea.hbm %s3427_s10, %s1984_s9 }
  0xa5   : > { %890 = vmatpush.msra.mxu0 %v831_v55  ;;  %913 = vmatpush.msra.mxu1 %v832_v56  ;;  %s1646_s1 = sshll.u32 %s1643_s28, 4  ;;  %s1647_s1 = int_to_ptr.hbm [resolvable:$true] %s1646_s1 }
  0xa6   : > { %936 = vmatpush.msra.mxu2 %v833_v57  ;;  %s2488_s15 = sshra.s32 %s1647_s1, 4  ;;  %s2489_s15 = int_to_ptr.hbm [resolvable:$true] %s2488_s15 }
  0xa7   : > { %891 = vmatpush.msra.mxu0 %v828_v58  ;;  %914 = vmatpush.msra.mxu1 %v829_v59  ;;  %p2495_p4 = scmp.lt.s32.totalorder %s2489_s15, %s3427_s10 }
  0xa8   : > { %937 = vmatpush.msra.mxu2 %v830_v60 }
  0xa9   : > { %892 = vmatpush.msra.mxu0 %v825_v61  ;;  %915 = vmatpush.msra.mxu1 %v826_v62 }
  0xaa   : > { %938 = vmatpush.msra.mxu2 %v827_v63 }
  0xab   : > { %893 = vmatpush.msra.mxu0 %v822_v0  ;;  %916 = vmatpush.msra.mxu1 %v823_v1 }
  0xac   : > { %939 = vmatpush.msra.mxu2 %v824_v4 }
 0x105   : > { %v770_v17 = vpop.xlane.xlu0 %769 }
 0x106   : > { %v780_v18 = vmul.f32 %v3025_v16, %v770_v17  ;;  %v768_v17 = vld [vmem:[%s2953_s22] sm:$0x3]  ;;  %s2623_s22 = smov 32  }
 0x107   : > { %v819_v27 = vperm.slane %v768_v17, 1 }
 0x108   : > { %v3029_v19 = vsub.f32 %v3012_v2, %v780_v18 }
 0x10a   : > { %v784_v20 = vmul.f32 %v3029_v19, %v3029_v19 }
 0x10c   : > { %786 = vadd.xlane.f32.xlu1 %v784_v20 }
 0x10d   : > { %v772_v21 = vpop.xlane.xlu0 %771 }
 0x10e   : > { %v781_v22 = vmul.f32 %v3025_v16, %v772_v21 }
 0x110   : > { %v3035_v23 = vsub.f32 %v3016_v3, %v781_v22  ;;  %v816_v22 = vperm.slane %v768_v17, 0 }
 0x112   : > { %v785_v24 = vmul.f32 %v3035_v23, %v3035_v23 }
 0x114   : > { %788 = vadd.xlane.f32.xlu1 %v785_v24 }
 0x17f   : > { %v787_v5 = vpop.xlane.xlu1 %786 }
 0x180   : > { %v790_v6 = vmul.f32 %v787_v5, %v3025_v16 }
 0x182   : > { %v792_v7 = vadd.f32 1e-05, %v790_v6 }
 0x184   : > { %2164 = vrsqrt.f32 %v792_v7  ;;  %vm800_vm2 = vweird.f32 %v792_v7 }
 0x187   : > { %v789_v8 = vpop.xlane.xlu1 %788 }
 0x188   : > { %v791_v9 = vmul.f32 %v789_v8, %v3025_v16 }
 0x18a   : > { %v2165_v10 = vpop.eup %2164  ;;  %v793_v11 = vadd.f32 1e-05, %v791_v9 }
 0x18b   : > { %v795_v12 = vmul.f32 %v2165_v10, %v792_v7  ;;  %vm801_vm1 = vweird.f32 %v2165_v10 }
 0x18c   : > { %2166 = vrsqrt.f32 %v793_v11  ;;  %vm802_vm3 = vmor %vm800_vm2, %vm801_vm1  ;;  %vm810_vm5 = vweird.f32 %v793_v11 }
 0x18d   : > { %v796_v13 = vmul.f32 %v2165_v10, %v795_v12 }
 0x18f   : > { %v797_v14 = vmul.f32 0.5, %v796_v13 }
 0x191   : > { %v798_v15 = vsub.f32 1.5, %v797_v14 }
 0x192   : > { %v2167_v18 = vpop.eup %2166 }
 0x193   : > { %v799_v20 = vmul.f32 %v2165_v10, %v798_v15  ;;  %v805_v21 = vmul.f32 %v2167_v18, %v793_v11  ;;  %vm811_vm4 = vweird.f32 %v2167_v18 }
 0x194   : > { %vm812_vm6 = vmor %vm810_vm5, %vm811_vm4 }
 0x195   : > { %v803_v24 = vsel %vm802_vm3, %v2165_v10, %v799_v20  ;;  %v806_v25 = vmul.f32 %v2167_v18, %v805_v21 }
 0x196   : > { %v814_v26 = vmul.f32 %v803_v24, %v3029_v19  ;;  %v870_v19 = vld [vmem:[%s2963_s30] sm:$0x7] }
 0x197   : > { %v807_v28 = vmul.f32 0.5, %v806_v25  ;;  %v872_v37 = vperm.slane %v870_v19, 0  ;;  %v873_v38 = vperm.slane %v870_v19, 1  ;;  %v874_v45 = vperm.slane %v870_v19, 2 }
 0x198   : > { %v817_v29 = vmul.f32 %v816_v22, %v814_v26 }
 0x199   : > { %v808_v30 = vsub.f32 1.5, %v807_v28 }
 0x19a   : > { %v820_v31 = vadd.f32 %v819_v27, %v817_v29 }
 0x19b   : > { %v809_v32 = vmul.f32 %v2167_v18, %v808_v30 }
 0x19c   : > { %894 = vmatmul.f32.vlgmr.msra.gmra.mxu0 %v820_v31  ;;  %917 = vmatmul.f32.vlgmr.msra.gmra.mxu1 %v820_v31 }
 0x19d   : > { %v813_v33 = vsel %vm812_vm6, %v2167_v18, %v809_v32  ;;  %940 = vmatmul.f32.vlgmr.msra.gmra.mxu2 %v820_v31 }
 0x19e   : > { %v815_v34 = vmul.f32 %v813_v33, %v3035_v23 }
 0x1a0   : > { %v818_v35 = vmul.f32 %v816_v22, %v815_v34 }
 0x1a2   : > { %v821_v36 = vadd.f32 %v819_v27, %v818_v35 }
 0x1a4   : > { %897 = vmatmul.f32.gmra.mxu0 %v821_v36  ;;  %920 = vmatmul.f32.gmra.mxu1 %v821_v36 }
 0x1a5   : > { %943 = vmatmul.f32.gmra.mxu2 %v821_v36 }
 0x219   : > { %v895_v39 = vpop.f32.mrf.mxu0  ;;  %v918_v40 = vpop.f32.mrf.mxu1 }
 0x21a   : > { %v3087_v41 = vadd.f32 %v895_v39, %v872_v37  ;;  %v919_v42 = vadd.f32 %v918_v40, %v873_v38 }
 0x21c   : > { %1041 = vrot.lane.b32.xlu0 %v919_v42, %s2621_s2  ;;  %1037 = vrot.lane.b32.xlu1 %v3087_v41, %s2621_s2 }
 0x220   : > { %v941_v23 = vpop.f32.mrf.mxu2 }
 0x221   : > { %v921_v43 = vpop.f32.mrf.mxu1  ;;  %v942_v47 = vadd.f32 %v941_v23, %v874_v45  ;;  %v898_v50 = vpop.f32.mrf.mxu0 }
 0x222   : > { %v922_v44 = vadd.f32 %v921_v43, %v873_v38  ;;  %v899_v51 = vadd.f32 %v898_v50, %v872_v37 }
 0x224   : > { %1141 = vrot.lane.b32.xlu0 %v919_v42, %s2622_s0  ;;  %1137 = vrot.lane.b32.xlu1 %v3087_v41, %s2622_s0 }
 0x225   : > { %1951 = vmatpush.xpose.msk.msra.mxu3 %vm947_vm7, %v922_v44 }
 0x228   : > { %v944_v46 = vpop.f32.mrf.mxu2 }
 0x229   : > { %v945_v48 = vadd.f32 %v944_v46, %v874_v45  ;;  %1952 = vmatpush.xpose.msk.msra.mxu3 %vm947_vm7, %v919_v42 }
 0x22b   : > { %v3097_v49 = vpack.i.bf16 %v942_v47, %v945_v48 }
 0x22c   : > { %1953 = vmatmul.msk.f32.vlgmr.msra.gmra.mxu3 %vm947_vm7, %v3087_v41 }
 0x22d   : > { %1028 = vmatpush.msrb.mxu3 %v945_v48 }
 0x22f   : > { %1029 = vmatpush.msrb.mxu3 %v942_v47 }
 0x234   : > { %1954 = vmatmul.msk.f32.gmra.mxu3 %vm947_vm7, %v899_v51 }
 0x28e   : > { %v1042_v5 = vpop.permute.xlu0 %1041  ;;  %v1038_v8 = vpop.permute.xlu1 %1037 }
 0x296   : > { %v1142_v10 = vpop.permute.xlu0 %1141  ;;  %v1138_v11 = vpop.permute.xlu1 %1137 }
 0x2af   : > { %v977_v52 = vpop.f32.mrf.mxu3 }
 0x2b0   : > { %v983_v53 = vmul.f32 0.17677669, %v977_v52 }
 0x2b2   : > { %v986_v54 = vsel %vm985_vm8, %v983_v53, -inf }
 0x2b3   : > { %987 = vmax.xlane.f32.xlu2 %v986_v54 }
 0x2b7   : > { %v980_v55 = vpop.f32.mrf.mxu3 }
 0x2b8   : > { %v984_v56 = vmul.f32 0.17677669, %v980_v55 }
 0x2ba   : > { %v989_v57 = vsel %vm985_vm8, %v984_v56, -inf }
 0x2bb   : > { %990 = vmax.xlane.f32.xlu2 %v989_v57 }
 0x2d3   : > { %1043 = vrot.lane.b32.xlu2 %v922_v44, %s2621_s2 }
 0x2db   : > { %1143 = vrot.lane.b32.xlu2 %v922_v44, %s2622_s0 }
 0x2e3   : > { %1039 = vrot.lane.b32.xlu2 %v899_v51, %s2621_s2 }
 0x2eb   : > { %1239 = vrot.lane.b32.xlu2 %v919_v42, %s2623_s22 }
 0x2f3   : > { %1237 = vrot.lane.b32.xlu2 %v899_v51, %s2623_s22 }
 0x326   : > { %v988_v58 = vpop.xlane.xlu2 %987 }
 0x327   : > { %v992_v59 = vsub.f32 %v983_v53, %v988_v58 }
 0x329   : > { %v994_v60 = vmul.f32 1.442695, %v992_v59 }
 0x32b   : > { %2168 = vpow2.f32 %v994_v60 }
 0x32e   : > { %v991_v61 = vpop.xlane.xlu2 %990 }
 0x32f   : > { %v993_v62 = vsub.f32 %v984_v56, %v991_v61 }
 0x331   : > { %v2169_v63 = vpop.eup %2168  ;;  %v996_v0 = vmul.f32 1.442695, %v993_v62 }
 0x332   : > { %v998_v1 = vsel %vm985_vm8, %v2169_v63, 0.0 }
 0x333   : > { %2170 = vpow2.f32 %v996_v0  ;;  %999 = vadd.xlane.f32.xlu0 %v998_v1 }
 0x336   : > { %v1044_v4 = vpop.permute.xlu2 %1043 }
 0x337   : > { %1957 = vmatpush.xpose.msk.msra.mxu3 %vm947_vm7, %v1044_v4 }
 0x339   : > { %v2171_v6 = vpop.eup %2170 }
 0x33a   : > { %v1001_v7 = vsel %vm985_vm8, %v2171_v6, 0.0 }
 0x33b   : > { %1002 = vadd.xlane.f32.xlu1 %v1001_v7  ;;  %1958 = vmatpush.xpose.msk.msra.mxu3 %vm947_vm7, %v1042_v5 }
 0x33e   : > { %v1144_v9 = vpop.permute.xlu2 %1143 }
 0x33f   : > { %1963 = vmatpush.xpose.msk.msrb.mxu2 %vm947_vm7, %v1144_v9 }
 0x343   : > { %1964 = vmatpush.xpose.msk.msrb.mxu2 %vm947_vm7, %v1142_v10 }
 0x346   : > { %1965 = vmatmul.msk.f32.vlgmr.msrb.gmra.mxu2 %vm947_vm7, %v1138_v11  ;;  %v1040_v17 = vpop.permute.xlu2 %1039 }
 0x347   : > { %1241 = vrot.lane.b32.xlu0 %v922_v44, %s2623_s22 }
 0x34e   : > { %v1240_v22 = vpop.permute.xlu2 %1239 }
 0x34f   : > { %1139 = vrot.lane.b32.xlu0 %v899_v51, %s2622_s0 }
 0x354   : > { %1235 = vrot.lane.b32.xlu1 %v3087_v41, %s2623_s22 }
 0x356   : > { %v1238_v29 = vpop.permute.xlu2 %1237 }
 0x3a6   : > { %v1000_v12 = vpop.xlane.xlu0 %999 }
 0x3a7   : > { %2172 = vrcp.f32 %v1000_v12 }
 0x3ad   : > { %v2173_v13 = vpop.eup %2172 }
 0x3ae   : > { %v1003_v14 = vpop.xlane.xlu1 %1002  ;;  %v1006_v15 = vmul.f32 %v2173_v13, %v2169_v63 }
 0x3af   : > { %2174 = vrcp.f32 %v1003_v14 }
 0x3b0   : > { %1955 = vmatmul.msk.f32.vlgmr.msrb.gmra.mxu3 %vm985_vm8, %v1006_v15 }
 0x3b5   : > { %v2175_v18 = vpop.eup %2174 }
 0x3b6   : > { %v1007_v20 = vmul.f32 %v2175_v18, %v2171_v6 }
 0x3b8   : > { %1956 = vmatmul.msk.f32.gmra.mxu3 %vm985_vm8, %v1007_v20 }
 0x3b9   : > { %v1242_v21 = vpop.permute.xlu0 %1241 }
 0x3ba   : > { %1969 = vmatpush.xpose.msk.msrb.mxu3 %vm947_vm7, %v1242_v21 }
 0x3be   : > { %1970 = vmatpush.xpose.msk.msrb.mxu3 %vm947_vm7, %v1240_v22 }
 0x3c0   : > { %1959 = vmatmul.msk.f32.vlgmr.msra.gmra.mxu3 %vm947_vm7, %v1038_v8 }
 0x3c1   : > { %v1140_v24 = vpop.permute.xlu0 %1139 }
 0x3c2   : > { %1966 = vmatmul.msk.f32.gmra.mxu2 %vm947_vm7, %v1140_v24 }
 0x3c6   : > { %v1236_v28 = vpop.permute.xlu1 %1235 }
 0x3c8   : > { %1960 = vmatmul.msk.f32.gmra.mxu3 %vm947_vm7, %v1040_v17 }
 0x3c9   : > { %v1170_v25 = vpop.f32.mrf.mxu2 }
 0x3ca   : > { %v1176_v26 = vmul.f32 0.17677669, %v1170_v25 }
 0x3cc   : > { %v1178_v27 = vsel %vm985_vm8, %v1176_v26, -inf }
 0x3cd   : > { %1179 = vmax.xlane.f32.xlu2 %v1178_v27 }
 0x3d0   : > { %1971 = vmatmul.msk.f32.vlgmr.msrb.gmra.mxu3 %vm947_vm7, %v1236_v28 }
 0x3d8   : > { %1972 = vmatmul.msk.f32.gmra.mxu3 %vm947_vm7, %v1238_v29 }
 0x433   : > { %v3130_v30 = vpop.f32.mrf.mxu3 }
 0x43b   : > { %v3132_v31 = vpop.f32.mrf.mxu3 }
 0x440   : > { %v1180_v37 = vpop.xlane.xlu2 %1179 }
 0x441   : > { %v1184_v40 = vsub.f32 %v1176_v26, %v1180_v37 }
 0x443   : > { %v1070_v32 = vpop.f32.mrf.mxu3  ;;  %v1186_v42 = vmul.f32 1.442695, %v1184_v40 }
 0x444   : > { %v1076_v33 = vmul.f32 0.17677669, %v1070_v32 }
 0x445   : > { %v1173_v34 = vpop.f32.mrf.mxu2  ;;  %2176 = vpow2.f32 %v1186_v42 }
 0x446   : > { %v1177_v35 = vmul.f32 0.17677669, %v1173_v34  ;;  %v1078_v36 = vsel %vm985_vm8, %v1076_v33, -inf }
 0x447   : > { %1079 = vmax.xlane.f32.xlu1 %v1078_v36 }
 0x448   : > { %v1181_v19 = vsel %vm985_vm8, %v1177_v35, -inf }
 0x449   : > { %1182 = vmax.xlane.f32.xlu0 %v1181_v19 }
 0x44b   : > { %v1073_v38 = vpop.f32.mrf.mxu3  ;;  %v3138_v45 = vpop.eup %2176 }
 0x44c   : > { %v1077_v39 = vmul.f32 0.17677669, %v1073_v38  ;;  %v1190_v48 = vsel %vm985_vm8, %v3138_v45, 0.0 }
 0x44e   : > { %v1081_v41 = vsel %vm985_vm8, %v1077_v39, -inf }
 0x451   : > { %1082 = vmax.xlane.f32.xlu0 %v1081_v41 }
 0x453   : > { %v1268_v23 = vpop.f32.mrf.mxu3 }
 0x454   : > { %v1274_v43 = vmul.f32 0.17677669, %v1268_v23 }
 0x456   : > { %v1276_v44 = vsel %vm985_vm8, %v1274_v43, -inf }
 0x457   : > { %1277 = vmax.xlane.f32.xlu1 %v1276_v44 }
 0x45b   : > { %v1271_v46 = vpop.f32.mrf.mxu3 }
 0x45c   : > { %v1275_v47 = vmul.f32 0.17677669, %v1271_v46 }
 0x45e   : > { %v1279_v50 = vsel %vm985_vm8, %v1275_v47, -inf }
 0x45f   : > { %1191 = vadd.xlane.f32.xlu1 %v1190_v48  ;;  %1280 = vmax.xlane.f32.xlu2 %v1279_v50  ;;  %v1380_v48 = vld [vmem:[%s2970_s8 + $0x78] sm:$0xff]  ;;  %v1379_v50 = vld [vmem:[%s2970_s8 + $0x70] sm:$0xff] }
 0x460   : > { %1385 = vmatpush.msrb.mxu1 %v1380_v48  ;;  %v1470_v48 = vld [vmem:[%s2978_s19 + $0x68] sm:$0xff] }
 0x462   : > { %1386 = vmatpush.msrb.mxu1 %v1379_v50  ;;  %v1467_v50 = vld [vmem:[%s2978_s19 + $0x50] sm:$0xff] }
 0x465   : > { %2146 = vrot.lane.b32.xlu0 %v3097_v49, %s2621_s2 }
 0x4ba   : > { %v1080_v51 = vpop.xlane.xlu1 %1079 }
 0x4bb   : > { %v1084_v52 = vsub.f32 %v1076_v33, %v1080_v51  ;;  %v1378_v51 = vld [vmem:[%s2970_s8 + $0x68] sm:$0xff] }
 0x4bc   : > { %v1183_v53 = vpop.xlane.xlu0 %1182  ;;  %1387 = vmatpush.msrb.mxu1 %v1378_v51  ;;  %v1468_v51 = vld [vmem:[%s2978_s19 + $0x58] sm:$0xff] }
 0x4bd   : > { %v1086_v54 = vmul.f32 1.442695, %v1084_v52  ;;  %v1185_v55 = vsub.f32 %v1177_v35, %v1183_v53  ;;  %v1377_v52 = vld [vmem:[%s2970_s8 + $0x60] sm:$0xff]  ;;  %v1376_v53 = vld [vmem:[%s2970_s8 + $0x58] sm:$0xff] }
 0x4be   : > { %1388 = vmatpush.msrb.mxu1 %v1377_v52  ;;  %v1465_v52 = vld [vmem:[%s2978_s19 + $0x40] sm:$0xff] }
 0x4bf   : > { %2178 = vpow2.f32 %v1086_v54  ;;  %v1188_v56 = vmul.f32 1.442695, %v1185_v55  ;;  %v1375_v54 = vld [vmem:[%s2970_s8 + $0x50] sm:$0xff]  ;;  %v1374_v55 = vld [vmem:[%s2970_s8 + $0x48] sm:$0xff] }
 0x4c0   : > { %1389 = vmatpush.msrb.mxu1 %v1376_v53  ;;  %v1466_v53 = vld [vmem:[%s2978_s19 + $0x48] sm:$0xff] }
 0x4c1   : > { %2180 = vpow2.f32 %v1188_v56 }
 0x4c2   : > { %1390 = vmatpush.msrb.mxu1 %v1375_v54  ;;  %v1463_v54 = vld [vmem:[%s2978_s19 + $0x30] sm:$0xff] }
 0x4c4   : > { %v1083_v57 = vpop.xlane.xlu0 %1082  ;;  %1391 = vmatpush.msrb.mxu1 %v1374_v55  ;;  %v1464_v55 = vld [vmem:[%s2978_s19 + $0x38] sm:$0xff] }
 0x4c5   : > { %v2179_v58 = vpop.eup %2178  ;;  %v1085_v59 = vsub.f32 %v1077_v39, %v1083_v57  ;;  %v1373_v57 = vld [vmem:[%s2970_s8 + $0x40] sm:$0xff] }
 0x4c6   : > { %v1090_v60 = vsel %vm985_vm8, %v2179_v58, 0.0  ;;  %1392 = vmatpush.msrb.mxu1 %v1373_v57  ;;  %v1462_v57 = vld [vmem:[%s2978_s19 + $0x28] sm:$0xff] }
 0x4c7   : > { %v2181_v61 = vpop.eup %2180  ;;  %v1088_v62 = vmul.f32 1.442695, %v1085_v59  ;;  %1091 = vadd.xlane.f32.xlu1 %v1090_v60  ;;  %v1371_v59 = vld [vmem:[%s2970_s8 + $0x30] sm:$0xff]  ;;  %v1370_v60 = vld [vmem:[%s2970_s8 + $0x28] sm:$0xff] }
 0x4c8   : > { %v1193_v63 = vsel %vm985_vm8, %v2181_v61, 0.0 }
 0x4c9   : > { %2182 = vpow2.f32 %v1088_v62  ;;  %1194 = vadd.xlane.f32.xlu0 %v1193_v63  ;;  %v1368_v62 = vld [vmem:[%s2970_s8 + $0x18] sm:$0xff]  ;;  %v1367_v63 = vld [vmem:[%s2970_s8 + $0x10] sm:$0xff] }
 0x4ca   : > { %v1278_v0 = vpop.xlane.xlu1 %1277 }
 0x4cb   : > { %v1282_v1 = vsub.f32 %v1274_v43, %v1278_v0  ;;  %v1366_v0 = vld [vmem:[%s2970_s8 + $0x8] sm:$0xff] }
 0x4cd   : > { %v1284_v4 = vmul.f32 1.442695, %v1282_v1  ;;  %v1365_v1 = vld [vmem:[%s2970_s8] sm:$0xff] }
 0x4cf   : > { %v2183_v5 = vpop.eup %2182  ;;  %2184 = vpow2.f32 %v1284_v4 }
 0x4d0   : > { %v1093_v6 = vsel %vm985_vm8, %v2183_v5, 0.0 }
 0x4d1   : > { %1094 = vadd.xlane.f32.xlu2 %v1093_v6 }
 0x4d2   : > { %v1281_v12 = vpop.xlane.xlu2 %1280  ;;  %v1192_v18 = vpop.xlane.xlu1 %1191 }
 0x4d3   : > { %v1283_v13 = vsub.f32 %v1275_v47, %v1281_v12 }
 0x4d5   : > { %v2185_v7 = vpop.eup %2184  ;;  %v1286_v14 = vmul.f32 1.442695, %v1283_v13 }
 0x4d6   : > { %v1288_v8 = vsel %vm985_vm8, %v2185_v7, 0.0 }
 0x4d7   : > { %1289 = vadd.xlane.f32.xlu1 %v1288_v8  ;;  %v2147_v9 = vpop.permute.xlu0 %2146  ;;  %2186 = vpow2.f32 %v1286_v14 }
 0x4d8   : > { %v2148_v10 = vunpack.i.l.bf16 %v2147_v9  ;;  %v2149_v11 = vunpack.i.h.bf16 %v2147_v9 }
 0x4da   : > { %1128 = vmatpush.msrb.mxu0 %v2148_v10 }
 0x4dc   : > { %1129 = vmatpush.msrb.mxu0 %v2149_v11 }
 0x4dd   : > { %v2187_v15 = vpop.eup %2186 }
 0x4de   : > { %v1291_v17 = vsel %vm985_vm8, %v2187_v15, 0.0 }
 0x4e9   : > { %2151 = vrot.lane.b32.xlu2 %v3097_v49, %s2622_s0 }
 0x4f0   : > { %2156 = vrot.lane.b32.xlu1 %v3097_v49, %s2623_s22 }
 0x512   : > { %1292 = vadd.xlane.f32.xlu2 %v1291_v17 }
 0x53a   : > { %v1092_v20 = vpop.xlane.xlu1 %1091 }
 0x53b   : > { %2188 = vrcp.f32 %v1092_v20 }
 0x53c   : > { %v1195_v49 = vpop.xlane.xlu0 %1194 }
 0x541   : > { %v2189_v21 = vpop.eup %2188 }
 0x542   : > { %v1098_v22 = vmul.f32 %v2189_v21, %v2179_v58  ;;  %v1372_v58 = vld [vmem:[%s2970_s8 + $0x38] sm:$0xff] }
 0x543   : > { %1393 = vmatpush.msrb.mxu1 %v1372_v58  ;;  %v1459_v58 = vld [vmem:[%s2978_s19 + $0x10] sm:$0xff] }
 0x544   : > { %v1095_v24 = vpop.xlane.xlu2 %1094  ;;  %1961 = vmatmul.msk.f32.vlgmr.msrb.gmra.mxu0 %vm985_vm8, %v1098_v22 }
 0x545   : > { %2190 = vrcp.f32 %v1095_v24  ;;  %1394 = vmatpush.msrb.mxu1 %v1371_v59  ;;  %v1460_v59 = vld [vmem:[%s2978_s19 + $0x18] sm:$0xff] }
 0x546   : > { %2192 = vrcp.f32 %v1192_v18 }
 0x547   : > { %2194 = vrcp.f32 %v1195_v49  ;;  %1395 = vmatpush.msrb.mxu1 %v1370_v60  ;;  %v1485_v49 = vld [vmem:[%s2978_s19 + $0xe0] sm:$0xff] }
 0x548   : > { %v1457_v60 = vld [vmem:[%s2978_s19] sm:$0xff] }
 0x54a   : > { %v1290_v36 = vpop.xlane.xlu1 %1289 }
 0x54b   : > { %v2191_v25 = vpop.eup %2190  ;;  %2196 = vrcp.f32 %v1290_v36  ;;  %v1484_v36 = vld [vmem:[%s2978_s19 + $0xd8] sm:$0xff] }
 0x54c   : > { %v2152_v26 = vpop.permute.xlu2 %2151  ;;  %v1099_v27 = vmul.f32 %v2191_v25, %v2183_v5  ;;  %v2193_v28 = vpop.eup %2192  ;;  %v1488_v25 = vld [vmem:[%s2978_s19 + $0xf8] sm:$0xff] }
 0x54d   : > { %v2153_v29 = vunpack.i.l.bf16 %v2152_v26  ;;  %v2154_v32 = vunpack.i.h.bf16 %v2152_v26  ;;  %v1198_v33 = vmul.f32 %v2193_v28, %v3138_v45  ;;  %v2195_v34 = vpop.eup %2194  ;;  %1518 = vmatpush.msra.mxu3 %v1488_v25  ;;  %v1486_v26 = vld [vmem:[%s2978_s19 + $0xe8] sm:$0xff] }
 0x54e   : > { %1962 = vmatmul.msk.f32.gmra.mxu0 %vm985_vm8, %v1099_v27  ;;  %v1199_v35 = vmul.f32 %v2195_v34, %v2181_v61  ;;  %v1369_v61 = vld [vmem:[%s2970_s8 + $0x20] sm:$0xff] }
 0x54f   : > { %1226 = vmatpush.msra.mxu2 %v2153_v29  ;;  %1396 = vmatpush.msrb.mxu1 %v1369_v61  ;;  %v1458_v61 = vld [vmem:[%s2978_s19 + $0x8] sm:$0xff] }
 0x550   : > { %1519 = vmatpush.msra.mxu3 %v1486_v26 }
 0x551   : > { %1227 = vmatpush.msra.mxu2 %v2154_v32  ;;  %v2197_v37 = vpop.eup %2196  ;;  %1397 = vmatpush.msrb.mxu1 %v1368_v62 }
 0x552   : > { %1967 = vmatmul.msk.f32.vlgmr.msra.gmra.mxu2 %vm985_vm8, %v1198_v33  ;;  %v1296_v40 = vmul.f32 %v2197_v37, %v2185_v7  ;;  %1520 = vmatpush.msra.mxu3 %v1484_v36  ;;  %v1482_v37 = vld [vmem:[%s2978_s19 + $0xc8] sm:$0xff] }
 0x553   : > { %1398 = vmatpush.msrb.mxu1 %v1367_v63 }
 0x554   : > { %1521 = vmatpush.msra.mxu3 %v1482_v37 }
 0x555   : > { %1399 = vmatpush.msrb.mxu1 %v1366_v0 }
 0x557   : > { %1400 = vmatpush.msrb.mxu1 %v1365_v1 }
 0x55a   : > { %1968 = vmatmul.msk.f32.gmra.mxu2 %vm985_vm8, %v1199_v35  ;;  %v1483_v35 = vld [vmem:[%s2978_s19 + $0xd0] sm:$0xff] }
 0x562   : > { %v2157_v19 = vpop.permute.xlu1 %2156 }
 0x563   : > { %v2158_v38 = vunpack.i.l.bf16 %v2157_v19  ;;  %v2159_v39 = vunpack.i.h.bf16 %v2157_v19  ;;  %v1481_v19 = vld [vmem:[%s2978_s19 + $0xc0] sm:$0xff] }
 0x565   : > { %1324 = vmatpush.msra.mxu0 %v2158_v38  ;;  %v1479_v38 = vld [vmem:[%s2978_s19 + $0xb0] sm:$0xff] }
 0x567   : > { %1325 = vmatpush.msra.mxu0 %v2159_v39  ;;  %v1480_v39 = vld [vmem:[%s2978_s19 + $0xb8] sm:$0xff] }
 0x568   : > { %1973 = vmatmul.msk.f32.vlgmr.msra.gmra.mxu0 %vm985_vm8, %v1296_v40  ;;  %1522 = vmatpush.msra.mxu3 %v1480_v39  ;;  %v1477_v40 = vld [vmem:[%s2978_s19 + $0xa0] sm:$0xff] }
 0x569   : > { %v1552_v39 = vld [vmem:[%s3000_s7 + $0x38] sm:$0xff] }
 0x585   : > { %v1293_v41 = vpop.xlane.xlu2 %1292 }
 0x586   : > { %2198 = vrcp.f32 %v1293_v41  ;;  %v1478_v41 = vld [vmem:[%s2978_s19 + $0xa8] sm:$0xff] }
 0x587   : > { %1523 = vmatpush.msra.mxu3 %v1478_v41  ;;  %v1551_v41 = vld [vmem:[%s3000_s7 + $0x30] sm:$0xff] }
 0x58c   : > { %v2199_v42 = vpop.eup %2198 }
 0x58d   : > { %v1297_v23 = vmul.f32 %v2199_v42, %v2187_v15  ;;  %v1475_v42 = vld [vmem:[%s2978_s19 + $0x90] sm:$0xff] }
 0x58f   : > { %1974 = vmatmul.msk.f32.gmra.mxu0 %vm985_vm8, %v1297_v23  ;;  %v1476_v23 = vld [vmem:[%s2978_s19 + $0x98] sm:$0xff] }
 0x590   : > { %1524 = vmatpush.msra.mxu3 %v1476_v23 }
 0x5c1   : > { %v1131_v43 = vpop.f32.mrf.mxu0 }
 0x5cb   : > { %v1134_v45 = vpop.f32.mrf.mxu0 }
 0x5d5   : > { %v1229_v44 = vpop.f32.mrf.mxu2 }
 0x5d6   : > { %1343 = vrot.lane.b32.xlu1 %v1229_v44, %s2622_s0  ;;  %v1474_v44 = vld [vmem:[%s2978_s19 + $0x88] sm:$0xff] }
 0x5d7   : > { %1525 = vmatpush.msra.mxu3 %v1474_v44  ;;  %v1566_v44 = vld [vmem:[%s3000_s7 + $0xa8] sm:$0xff] }
 0x5dd   : > { %v1232_v47 = vpop.f32.mrf.mxu2 }
 0x5de   : > { %1335 = vrot.lane.b32.xlu1 %v1131_v43, %s2623_s22  ;;  %v1473_v43 = vld [vmem:[%s2978_s19 + $0x80] sm:$0xff] }
 0x5e5   : > { %v1327_v46 = vpop.f32.mrf.mxu0 }
 0x5e6   : > { %1337 = vrot.lane.b32.xlu1 %v1134_v45, %s2623_s22  ;;  %1351 = vrot.lane.b32.xlu0 %v1327_v46, %s2621_s2  ;;  %v1471_v45 = vld [vmem:[%s2978_s19 + $0x70] sm:$0xff]  ;;  %v1472_v46 = vld [vmem:[%s2978_s19 + $0x78] sm:$0xff] }
 0x5e7   : > { %1526 = vmatpush.msra.mxu3 %v1472_v46  ;;  %v1549_v46 = vld [vmem:[%s3000_s7 + $0x20] sm:$0xff] }
 0x5e9   : > { %1527 = vmatpush.msra.mxu3 %v1470_v48 }
 0x5eb   : > { %1528 = vmatpush.msra.mxu3 %v1468_v51  ;;  %v1564_v51 = vld [vmem:[%s3000_s7 + $0x98] sm:$0xff] }
 0x5ed   : > { %1529 = vmatpush.msra.mxu3 %v1466_v53 }
 0x5ee   : > { %1345 = vrot.lane.b32.xlu1 %v1232_v47, %s2622_s0  ;;  %v1469_v47 = vld [vmem:[%s2978_s19 + $0x60] sm:$0xff] }
 0x5ef   : > { %1530 = vmatpush.msra.mxu3 %v1464_v55 }
 0x5f1   : > { %1531 = vmatpush.msra.mxu3 %v1462_v57  ;;  %v1563_v57 = vld [vmem:[%s3000_s7 + $0x90] sm:$0xff] }
 0x5f3   : > { %1532 = vmatpush.msra.mxu3 %v1460_v59  ;;  %v1562_v59 = vld [vmem:[%s3000_s7 + $0x88] sm:$0xff] }
 0x5f5   : > { %1533 = vmatpush.msra.mxu3 %v1458_v61  ;;  %v1561_v61 = vld [vmem:[%s3000_s7 + $0x80] sm:$0xff] }
 0x60c   : > { %v1330_v56 = vpop.f32.mrf.mxu0 }
 0x60d   : > { %1353 = vrot.lane.b32.xlu2 %v1330_v56, %s2621_s2  ;;  %v1461_v56 = vld [vmem:[%s2978_s19 + $0x20] sm:$0xff] }
 0x648   : > { %v1344_v4 = vpop.permute.xlu1 %1343 }
 0x650   : > { %v1336_v5 = vpop.permute.xlu1 %1335 }
 0x651   : > { %v1357_v6 = vsel %vm947_vm7, %v3130_v30, %v1336_v5  ;;  %v2160_v30 = vld [vmem:[%s3424_s13] ss:$0 sm:$0xff]  ;;  %v1560_v5 = vld [vmem:[%s3000_s7 + $0x78] sm:$0xff] }
 0x652   : > { %v1360_v8 = vsel %vm1359_vm9, %v1357_v6, %v1344_v4  ;;  %v1576_v6 = vld [vmem:[%s3000_s7 + $0xf8] sm:$0xff]  ;;  %1581 = vmatpush.msrb.mxu0 %v1560_v5 }
 0x653   : > { %1604 = vmatpush.msra.mxu1 %v1576_v6 }
 0x658   : > { %v1352_v7 = vpop.permute.xlu0 %1351  ;;  %v1338_v10 = vpop.permute.xlu1 %1337 }
 0x659   : > { %v1363_v9 = vsel %vm1362_vm10, %v1360_v8, %v1352_v7  ;;  %v1358_v12 = vsel %vm947_vm7, %v3132_v31, %v1338_v10  ;;  %v1487_v31 = vld [vmem:[%s2978_s19 + $0xf0] sm:$0xff] }
 0x65a   : > { %1401 = vmatmul.f32.vlgmr.msrb.gmra.mxu1 %v1363_v9  ;;  %1495 = vmatpush.msrb.mxu2 %v1487_v31  ;;  %v1559_v7 = vld [vmem:[%s3000_s7 + $0x70] sm:$0xff]  ;;  %v1558_v10 = vld [vmem:[%s3000_s7 + $0x68] sm:$0xff]  ;;  %v1572_v31 = vld [vmem:[%s3000_s7 + $0xd8] sm:$0xff] }
 0x65b   : > { %v1575_v8 = vld [vmem:[%s3000_s7 + $0xf0] sm:$0xff]  ;;  %1582 = vmatpush.msrb.mxu0 %v1559_v7 }
 0x65c   : > { %1496 = vmatpush.msrb.mxu2 %v1485_v49  ;;  %1605 = vmatpush.msra.mxu1 %v1575_v8  ;;  %v1571_v49 = vld [vmem:[%s3000_s7 + $0xd0] sm:$0xff] }
 0x65d   : > { %1583 = vmatpush.msrb.mxu0 %v1558_v10 }
 0x65e   : > { %1497 = vmatpush.msrb.mxu2 %v1483_v35  ;;  %v1569_v35 = vld [vmem:[%s3000_s7 + $0xc0] sm:$0xff] }
 0x660   : > { %v1346_v11 = vpop.permute.xlu1 %1345  ;;  %1498 = vmatpush.msrb.mxu2 %v1481_v19 }
 0x661   : > { %v1361_v13 = vsel %vm1359_vm9, %v1358_v12, %v1346_v11  ;;  %v1574_v11 = vld [vmem:[%s3000_s7 + $0xe8] sm:$0xff] }
 0x662   : > { %1499 = vmatpush.msrb.mxu2 %v1479_v38  ;;  %1606 = vmatpush.msra.mxu1 %v1574_v11 }
 0x664   : > { %1500 = vmatpush.msrb.mxu2 %v1477_v40 }
 0x666   : > { %1501 = vmatpush.msrb.mxu2 %v1475_v42  ;;  %v1567_v42 = vld [vmem:[%s3000_s7 + $0xb0] sm:$0xff] }
 0x667   : > { %v1354_v14 = vpop.permute.xlu2 %1353 }
 0x668   : > { %v1364_v15 = vsel %vm1362_vm10, %v1361_v13, %v1354_v14  ;;  %1502 = vmatpush.msrb.mxu2 %v1473_v43  ;;  %v1550_v43 = vld [vmem:[%s3000_s7 + $0x28] sm:$0xff] }
 0x669   : > { %1404 = vmatmul.f32.gmra.mxu1 %v1364_v15  ;;  %v1557_v15 = vld [vmem:[%s3000_s7 + $0x60] sm:$0xff] }
 0x66a   : > { %1503 = vmatpush.msrb.mxu2 %v1471_v45  ;;  %1584 = vmatpush.msrb.mxu0 %v1557_v15 }
 0x66c   : > { %1504 = vmatpush.msrb.mxu2 %v1469_v47  ;;  %v1565_v47 = vld [vmem:[%s3000_s7 + $0xa0] sm:$0xff] }
 0x66e   : > { %1505 = vmatpush.msrb.mxu2 %v1467_v50  ;;  %v1548_v50 = vld [vmem:[%s3000_s7 + $0x18] sm:$0xff] }
 0x670   : > { %1506 = vmatpush.msrb.mxu2 %v1465_v52 }
 0x672   : > { %1507 = vmatpush.msrb.mxu2 %v1463_v54 }
 0x674   : > { %1508 = vmatpush.msrb.mxu2 %v1461_v56  ;;  %v1547_v56 = vld [vmem:[%s3000_s7 + $0x10] sm:$0xff] }
 0x676   : > { %1509 = vmatpush.msrb.mxu2 %v1459_v58  ;;  %v1546_v58 = vld [vmem:[%s3000_s7 + $0x8] sm:$0xff] }
 0x678   : > { %1510 = vmatpush.msrb.mxu2 %v1457_v60  ;;  %v1545_v60 = vld [vmem:[%s3000_s7] sm:$0xff] }
 0x6d7   : > { %v1402_v17 = vpop.f32.mrf.mxu1 }
 0x6d8   : > { %v1403_v18 = vadd.f32 %v2160_v30, %v1402_v17  ;;  %v3252_v17 = vld [vmem:[%s2998_s24] sm:$0x3] }
 0x6d9   : > { %v1451_v26 = vperm.slane %v3252_v17, 0 }
 0x6da   : > { %v3190_v20 = vadd.f32 %v1403_v18, %v3012_v2 }
 0x6dc   : > { %1411 = vadd.xlane.f32.xlu1 %v3190_v20 }
 0x6e6   : > { %v1405_v21 = vpop.f32.mrf.mxu1 }
 0x6e7   : > { %v1406_v22 = vadd.f32 %v2160_v30, %v1405_v21  ;;  %v1573_v30 = vld [vmem:[%s3000_s7 + $0xe0] sm:$0xff] }
 0x6e8   : > { %1607 = vmatpush.msra.mxu1 %v1573_v30 }
 0x6e9   : > { %v3194_v24 = vadd.f32 %v1406_v22, %v3016_v3  ;;  %v1556_v22 = vld [vmem:[%s3000_s7 + $0x58] sm:$0xff] }
 0x6ea   : > { %1585 = vmatpush.msrb.mxu0 %v1556_v22  ;;  %1608 = vmatpush.msra.mxu1 %v1572_v31 }
 0x6eb   : > { %1413 = vadd.xlane.f32.xlu0 %v3194_v24 }
 0x6ec   : > { %1609 = vmatpush.msra.mxu1 %v1571_v49 }
 0x74f   : > { %v1412_v2 = vpop.xlane.xlu1 %1411 }
 0x750   : > { %v1415_v27 = vmul.f32 %v1412_v2, %v3025_v16 }
 0x752   : > { %v3203_v3 = vsub.f32 %v3190_v20, %v1415_v27  ;;  %v1554_v27 = vld [vmem:[%s3000_s7 + $0x48] sm:$0xff] }
 0x754   : > { %v1419_v28 = vmul.f32 %v3203_v3, %v3203_v3 }
 0x756   : > { %1421 = vadd.xlane.f32.xlu2 %v1419_v28  ;;  %v1570_v28 = vld [vmem:[%s3000_s7 + $0xc8] sm:$0xff] }
 0x757   : > { %1610 = vmatpush.msra.mxu1 %v1570_v28 }
 0x759   : > { %1611 = vmatpush.msra.mxu1 %v1569_v35 }
 0x75e   : > { %v1414_v29 = vpop.xlane.xlu0 %1413 }
 0x75f   : > { %v1416_v32 = vmul.f32 %v1414_v29, %v3025_v16 }
 0x761   : > { %v3209_v33 = vsub.f32 %v3194_v24, %v1416_v32  ;;  %v1454_v32 = vperm.slane %v3252_v17, 1 }
 0x763   : > { %v1420_v34 = vmul.f32 %v3209_v33, %v3209_v33 }
 0x765   : > { %1423 = vadd.xlane.f32.xlu1 %v1420_v34  ;;  %v1553_v34 = vld [vmem:[%s3000_s7 + $0x40] sm:$0xff] }
 0x7c9   : > { %v1422_v62 = vpop.xlane.xlu2 %1421 }
 0x7ca   : > { %v1425_v63 = vmul.f32 %v1422_v62, %v3025_v16 }
 0x7cc   : > { %v1427_v0 = vadd.f32 1e-05, %v1425_v63 }
 0x7ce   : > { %2200 = vrsqrt.f32 %v1427_v0  ;;  %vm1435_vm12 = vweird.f32 %v1427_v0 }
 0x7d4   : > { %v2201_v1 = vpop.eup %2200 }
 0x7d5   : > { %v1430_v4 = vmul.f32 %v2201_v1, %v1427_v0  ;;  %vm1436_vm11 = vweird.f32 %v2201_v1 }
 0x7d6   : > { %vm1437_vm13 = vmor %vm1435_vm12, %vm1436_vm11 }
 0x7d7   : > { %v1431_v9 = vmul.f32 %v2201_v1, %v1430_v4 }
 0x7d8   : > { %v1424_v12 = vpop.xlane.xlu1 %1423 }
 0x7d9   : > { %v1432_v13 = vmul.f32 0.5, %v1431_v9  ;;  %v1426_v14 = vmul.f32 %v1424_v12, %v3025_v16  ;;  %v1555_v16 = vld [vmem:[%s3000_s7 + $0x50] sm:$0xff] }
 0x7da   : > { %1586 = vmatpush.msrb.mxu0 %v1555_v16 }
 0x7db   : > { %v1433_v18 = vsub.f32 1.5, %v1432_v13  ;;  %v1428_v21 = vadd.f32 1e-05, %v1426_v14  ;;  %v2161_v14 = vld [vmem:[%s757_s6] ss:$0 sm:$0xff]  ;;  %s2490_s6 = scalar_lea.hbm %s2489_s15, 16 }
 0x7dc   : > { %1587 = vmatpush.msrb.mxu0 %v1554_v27  ;;  %p2491_p8 = scmp.ne.s32.totalorder %s2489_s15, %s2490_s6  ;;  %p2496_p6 = scmp.lt.s32.totalorder %s2494_s5, %s2490_s6 }
 0x7dd   : > { %v1434_v25 = vmul.f32 %v2201_v1, %v1433_v18  ;;  %2202 = vrsqrt.f32 %v1428_v21  ;;  %vm1445_vm15 = vweird.f32 %v1428_v21 }
 0x7de   : > { %1588 = vmatpush.msrb.mxu0 %v1553_v34  ;;  %p2492_p11 = pnand %p2491_p8, %p2871_p1  ;;  %p2497_p0 = por %p2496_p6, %p2495_p4 }
 0x7df   : > { %v1438_v2 = vsel %vm1437_vm13, %v2201_v1, %v1434_v25 }
 0x7e0   : > { %v1449_v29 = vmul.f32 %v1438_v2, %v3203_v3  ;;  %v1568_v3 = vld [vmem:[%s3000_s7 + $0xb8] sm:$0xff]  ;;  %1589 = vmatpush.msrb.mxu0 %v1552_v39  ;;  %p2493_p12 = pneg %p2492_p11 }
 0x7e1   : > { %1612 = vmatpush.msra.mxu1 %v1568_v3 }
 0x7e2   : > { %v1452_v36 = vmul.f32 %v1451_v26, %v1449_v29  ;;  %1590 = vmatpush.msrb.mxu0 %v1551_v41  ;;  %p2498_p7 = pnand %p2497_p0, %p2493_p12 }
 0x7e3   : > { %v2203_v19 = vpop.eup %2202  ;;  %1613 = vmatpush.msra.mxu1 %v1567_v42 }
 0x7e4   : > { %v1440_v37 = vmul.f32 %v2203_v19, %v1428_v21  ;;  %v1455_v38 = vadd.f32 %v1454_v32, %v1452_v36  ;;  %vm1446_vm14 = vweird.f32 %v2203_v19  ;;  %1591 = vmatpush.msrb.mxu0 %v1550_v43 }
 0x7e5   : > { %1614 = vmatpush.msra.mxu1 %v1566_v44  ;;  %vm1447_vm0 = vmor %vm1445_vm15, %vm1446_vm14 }
 0x7e6   : > { %v1441_v40 = vmul.f32 %v2203_v19, %v1440_v37  ;;  %1511 = vmatmul.f32.vlgmr.msrb.gmra.mxu2 %v1455_v38  ;;  %1534 = vmatmul.f32.vlgmr.msra.gmra.mxu3 %v1455_v38 }
 0x7e7   : > { %1592 = vmatpush.msrb.mxu0 %v1549_v46  ;;  %1615 = vmatpush.msra.mxu1 %v1565_v47 }
 0x7e8   : > { %v1442_v23 = vmul.f32 0.5, %v1441_v40 }
 0x7e9   : > { %1593 = vmatpush.msrb.mxu0 %v1548_v50  ;;  %1616 = vmatpush.msra.mxu1 %v1564_v51 }
 0x7ea   : > { %v1443_v45 = vsub.f32 1.5, %v1442_v23 }
 0x7eb   : > { %1594 = vmatpush.msrb.mxu0 %v1547_v56  ;;  %1617 = vmatpush.msra.mxu1 %v1563_v57 }
 0x7ec   : > { %v1444_v48 = vmul.f32 %v2203_v19, %v1443_v45 }
 0x7ed   : > { %1595 = vmatpush.msrb.mxu0 %v1546_v58  ;;  %1618 = vmatpush.msra.mxu1 %v1562_v59 }
 0x7ee   : > { %v1448_v52 = vsel %vm1447_vm0, %v2203_v19, %v1444_v48 }
 0x7ef   : > { %v1450_v53 = vmul.f32 %v1448_v52, %v3209_v33  ;;  %1596 = vmatpush.msrb.mxu0 %v1545_v60  ;;  %1619 = vmatpush.msra.mxu1 %v1561_v61  ;;  %v1489_v33 = vld [vmem:[%s2980_s12] sm:$0x3] }
 0x7f0   : > { %v1491_v62 = vperm.slane %v1489_v33, 0  ;;  %v1492_v63 = vperm.slane %v1489_v33, 1 }
 0x7f1   : > { %v1453_v54 = vmul.f32 %v1451_v26, %v1450_v53 }
 0x7f3   : > { %v1456_v55 = vadd.f32 %v1454_v32, %v1453_v54 }
 0x7f5   : > { %1514 = vmatmul.f32.gmra.mxu2 %v1456_v55  ;;  %1537 = vmatmul.f32.gmra.mxu3 %v1456_v55 }
 0x869   : > { %v1512_v0 = vpop.f32.mrf.mxu2  ;;  %v1535_v1 = vpop.f32.mrf.mxu3 }
 0x86a   : > { %v1513_v4 = vadd.f32 %v1512_v0, %v1491_v62  ;;  %v1536_v5 = vadd.f32 %v1535_v1, %v1492_v63 }
 0x86c   : > { %v1541_v6 = vmax.f32 %v1513_v4, 0.0  ;;  %v1542_v7 = vmax.f32 %v1536_v5, 0.0 }
 0x86e   : > { %1597 = vmatmul.f32.vlgmr.msrb.gmra.mxu0 %v1541_v6  ;;  %1620 = vmatmul.f32.vlgmr.msra.gmra.mxu1 %v1542_v7 }
 0x878   : > { %v1515_v8 = vpop.f32.mrf.mxu2  ;;  %v1538_v9 = vpop.f32.mrf.mxu3 }
 0x879   : > { %v1516_v10 = vadd.f32 %v1515_v8, %v1491_v62  ;;  %v1539_v11 = vadd.f32 %v1538_v9, %v1492_v63 }
 0x87b   : > { %v1543_v12 = vmax.f32 %v1516_v10, 0.0  ;;  %v1544_v13 = vmax.f32 %v1539_v11, 0.0 }
 0x87d   : > { %1600 = vmatmul.f32.gmra.mxu0 %v1543_v12  ;;  %1623 = vmatmul.f32.gmra.mxu1 %v1544_v13 }
 0x8eb   : > { %v1598_v15 = vpop.f32.mrf.mxu0  ;;  %v1621_v17 = vpop.f32.mrf.mxu1 }
 0x8ec   : > { %v1599_v30 = vadd.f32 %v2161_v14, %v1598_v15 }
 0x8ee   : > { %v1622_v18 = vadd.f32 %v1621_v17, %v1599_v30 }
 0x8f0   : > { %v1627_v21 = vadd.f32 %v1622_v18, %v3190_v20 }
 0x8f2   : > { %1629 = vst [vmem:[%s3004_s17] sm:$0xff] %v1627_v21 }
 0x8fa   : > { %v1601_v22 = vpop.f32.mrf.mxu0  ;;  %v1624_v25 = vpop.f32.mrf.mxu1 }
 0x8fb   : > { %v1602_v31 = vadd.f32 %v2161_v14, %v1601_v22 }
 0x8fd   : > { %v1625_v16 = vadd.f32 %v1624_v25, %v1602_v31 }
 0x8ff   : > { %v1628_v49 = vadd.f32 %v1625_v16, %v3194_v24 }
 0x901   : > { %1630 = vst [vmem:[%s3004_s17 + $0x8] sm:$0xff] %v1628_v49 }
 0x902   : > { %2501 = shalt.err (!%p2498_p7)
}
 0x903   : > { %s2624_s11 = smov 128   ;;  %s2625_s17 = smov 8  }
 0x904   : > { %2009 = dma.vmem_to_hbm [thread:$0]  (%p2871_p1), %s1645_s16, 256, %s1647_s1, %s1632_s23, %s2624_s11, %s2624_s11, %s2625_s17  }
 0x905 PF: > { %p2044_p9 = scmp.ge.s32.totalorder %s2612_s27, 2  ;;  %s1661_s22 = sand.u32 1, %s2584_s20  }
 0x906   : > { %s1662_s13 = scalar_lea.sflag [#allocation4], %s1661_s22 }
 0x907   : > { %p2040_p10 = pnand %p2044_p9, %p2878_p2 }
 0x909   : > { %p2041_p13 = pneg %p2040_p10 }
 0x90b   : > { %2567 = dma.done.wait (%p2041_p13), %s1662_s13, 256  }
 0x90c   : > { %2569 = vsyncadd (%p2041_p13), %s1662_s13, 4294967040  ;;  %s39_s27 = sadd.s32 1, %s2612_s27   ;;  %s3429_s26 = sld [smem:[#allocation24_spill]] }
 0x90d   : > { %p36_p3 = scmp.ge.s32.totalorder %s39_s27, 6   ;;  %s3430_s19 = sld [smem:[#allocation32_spill]] }
 0x90e   : > { %s3431_s3 = sld [smem:[#allocation25_spill]]  ;;  %s3436_s17 = smov %s2576_s18 }
 0x90f   : > { %s3432_s22 = sld [smem:[#allocation33_spill]]  ;;  %s3438_s20 = smov %s2588_s21 }
 0x910   : > { %s3433_s24 = sld [smem:[#allocation28_spill]]  ;;  %s3440_s23 = smov %s2604_s25 }
 0x911   : > { %s3434_s30 = sld [smem:[#allocation30_spill]] }
 0x912   : > { %s3435_s8 = sld [smem:[#allocation31_spill]]  ;;  %s3437_s18 = smov %s3429_s26 }
 0x914   : > { %s3439_s21 = smov %s3431_s3  ;;  %38 = sbr.rel (!%p36_p3) target bundleno = 29 (0x1d), region = 215 }
 0x917   : > { %s3441_s25 = smov %s3434_s30 }
 0x918   : > { %s3442_s26 = smov %s3435_s8 }
 0x919   :  { %1668 = vsyncpa [#allocation3], 1 }
 0x91a   :  { %1670 = vsyncpa [#allocation3 + $0x1], 1 }
 0x91b   :  { %1671 = vsyncpa [#allocation6], 1 }
 0x91c   :  { %1673 = vsyncpa [#allocation6 + $0x1], 1 }
 0x91d   :  { %1674 = vsyncpa [#allocation9], 1 }
 0x91e   :  { %1676 = vsyncpa [#allocation9 + $0x1], 1 }
 0x91f   :  { %1677 = vsyncpa [#allocation12], 1 }
 0x920   :  { %1679 = vsyncpa [#allocation12 + $0x1], 1 }
 0x921   :  { %1680 = vsyncpa [#allocation15], 1 }
 0x922   :  { %1682 = vsyncpa [#allocation15 + $0x1], 1 }
 0x923   :  { %1683 = vsyncpa [#allocation4], 1 }
 0x924   :  { %1685 = vsyncpa [#allocation4 + $0x1], 1 }

</bundles_post_ra>
